<compile_context>
chip_gen: v7x
topology: tpu7x:2x2x1
jax: 0.10.0
libtpu: 0.0.40
codegen_flags: <defaults>
</compile_context>

<pallas_src>
import functools

import jax
import jax.numpy as jnp
from jax.experimental import pallas as pl
from jax.experimental.pallas import tpu as pltpu

EPS = 1e-5
LANE = 128                       # lane width / channel padding quantum
MM_TM = 512                      # max MXU row tile
EW_BUDGET = 4 * 1024 * 1024      # per-block byte budget for elementwise kernels


# ------------------------------- helpers ----------------------------------- #

def _ceil_to(x, m):
    return ((x + m - 1) // m) * m


def _pad2d(x, rows, cols):
    r, c = x.shape
    if r == rows and c == cols:
        return x
    return jnp.pad(x, ((0, rows - r), (0, cols - c)))


def _pad_vec(v, cols):
    v = v.astype(jnp.float32)
    return jnp.pad(v, (0, cols - v.shape[0])).reshape(1, cols)


def _row_tile(cols, taps, itemsize, m):
    """Largest row tile (multiple of 8, <= 1024) within the VMEM byte budget."""
    t = EW_BUDGET // max(1, taps * cols * itemsize)
    t = max(8, min(1024, (t // 8) * 8))
    return min(t, _ceil_to(m, 8))


def _bn_coeffs(sum_c, sq_c, gamma, beta, m):
    """Batch-norm (training mode) scale/shift from per-channel sums."""
    mean = sum_c / m
    var = jnp.maximum(sq_c / m - mean * mean, 0.0)     # biased variance
    inv = gamma * jax.lax.rsqrt(var + EPS)
    return inv, beta - mean * inv


# --------------------------- tiled MXU matmul ------------------------------- #

def _matmul_kernel(*refs, n_in, prologue, bias, stats, out_dtype, tm,
                   m_true, mask_rows):
    n_out = 3 if stats else 1
    ins = refs[:n_in]
    outs = refs[n_in:n_in + n_out]
    acc_ref = refs[n_in + n_out]

    pos = 0
    a_ref = ins[pos]; pos += 1
    b_ref = ins[pos]; pos += 1
    if prologue:
        s_ref = ins[pos]; t_ref = ins[pos + 1]; pos += 2
    if bias:
        bias_ref = ins[pos]; pos += 1
    o_ref = outs[0]

    i = pl.program_id(0)
    k = pl.program_id(2)

    @pl.when(k == 0)
    def _():
        acc_ref[...] = jnp.zeros_like(acc_ref)

    a = a_ref[...]
    if prologue:                       # fused BN + ReLU of the input (f32 VPU)
        a = jnp.maximum(a.astype(jnp.float32) * s_ref[...] + t_ref[...], 0.0)
    a = a.astype(jnp.bfloat16)         # MXU in bf16, accumulate in f32
    acc_ref[...] += jnp.dot(a, b_ref[...], preferred_element_type=jnp.float32)

    @pl.when(k == pl.num_programs(2) - 1)
    def _():
        r = acc_ref[...]
        if bias:
            r = r + bias_ref[...].astype(jnp.float32)
        o_ref[...] = r.astype(out_dtype)
        if stats:                       # per-row-tile partial BN statistics
            y = r
            if mask_rows:
                row = jax.lax.broadcasted_iota(jnp.int32, y.shape, 0) + i * tm
                y = jnp.where(row < m_true, y, 0.0)
            outs[1][...] = jnp.sum(y, axis=0, keepdims=True)[None]
            outs[2][...] = jnp.sum(y * y, axis=0, keepdims=True)[None]


def fused_matmul(a, b_packed, *, scale=None, shift=None, bias=None,
                 stats=False, out_dtype=jnp.bfloat16):
    """(M,K) @ pre-packed bf16 (Kp,Np) -> (Mp,Np).

    Optional per-K-column scale/shift (+ReLU) prologue fuses BatchNorm+ReLU of
    the input, optional per-N-column bias epilogue, and optional per-channel
    sum / sum-of-squares outputs of the result (batch-norm statistics).
    """
    M, K = a.shape
    Kp, Np = b_packed.shape
    tm = min(MM_TM, _ceil_to(M, 8))
    Mp = _ceil_to(M, tm)
    a = _pad2d(a, Mp, Kp)

    tk = 256 if Kp % 256 == 0 else 128
    tn = 256 if Np % 256 == 0 else 128
    ni, nj, nk = Mp // tm, Np // tn, Kp // tk

    prologue = scale is not None
    use_bias = bias is not None

    in_specs = [pl.BlockSpec((tm, tk), lambda i, j, k: (i, k)),
                pl.BlockSpec((tk, tn), lambda i, j, k: (k, j))]
    operands = [a, b_packed]
    if prologue:
        in_specs += [pl.BlockSpec((1, tk), lambda i, j, k: (0, k)),
                     pl.BlockSpec((1, tk), lambda i, j, k: (0, k))]
        operands += [scale.reshape(1, Kp).astype(jnp.float32),
                     shift.reshape(1, Kp).astype(jnp.float32)]
    if use_bias:
        in_specs += [pl.BlockSpec((1, tn), lambda i, j, k: (0, j))]
        operands += [bias.reshape(1, Np).astype(jnp.float32)]

    out_shape = [jax.ShapeDtypeStruct((Mp, Np), out_dtype)]
    out_specs = [pl.BlockSpec((tm, tn), lambda i, j, k: (i, j))]
    if stats:
        out_shape += [jax.ShapeDtypeStruct((ni, 1, Np), jnp.float32)] * 2
        out_specs += [pl.BlockSpec((1, 1, tn), lambda i, j, k: (i, 0, j))] * 2

    kernel = functools.partial(
        _matmul_kernel, n_in=len(operands), prologue=prologue, bias=use_bias,
        stats=stats, out_dtype=out_dtype, tm=tm, m_true=M,
        mask_rows=(Mp != M))

    res = pl.pallas_call(
        kernel,
        out_shape=tuple(out_shape) if stats else out_shape[0],
        grid=(ni, nj, nk),
        in_specs=in_specs,
        out_specs=tuple(out_specs) if stats else out_specs[0],
        scratch_shapes=[pltpu.VMEM((tm, tn), jnp.float32)],
        compiler_params=pltpu.CompilerParams(
            dimension_semantics=("parallel", "parallel", "arbitrary")),
    )(*operands)

    if stats:
        out, s, q = res
        return out, jnp.sum(s, axis=(0, 1)), jnp.sum(q, axis=(0, 1))
    return res


# ------------------ fused BN+ReLU + 3x3 conv (no HBM im2col) ---------------- #

def _conv3x3_kernel(x_ref, w_ref, s_ref, t_ref, o_ref, sum_ref, sq_ref, *,
                    H, W, OW_c, Cp, Op):
    """One zero-padded image per grid step: BN+ReLU prologue, 9-tap in-VMEM
    im2col matmul, per-channel batch-stat partials of the output."""
    Hp, Wpc = H + 2, OW_c + 2
    x = x_ref[0].astype(jnp.float32)                      # (Hp, Wpc, Cp)
    s = s_ref[...].reshape(1, 1, Cp)
    t = t_ref[...].reshape(1, 1, Cp)
    xb = jnp.maximum(x * s + t, 0.0)
    # keep the conv's zero padding (and width padding) exactly zero
    hh = jax.lax.broadcasted_iota(jnp.int32, (Hp, Wpc, Cp), 0)
    ww = jax.lax.broadcasted_iota(jnp.int32, (Hp, Wpc, Cp), 1)
    inside = (hh >= 1) & (hh <= H) & (ww >= 1) & (ww <= W)
    xb = jnp.where(inside, xb, 0.0).astype(jnp.bfloat16)

    acc = None
    for kh in range(3):
        for kw in range(3):
            tap = xb[kh:kh + H, kw:kw + OW_c, :].reshape(H * OW_c, Cp)
            wt = w_ref[(kh * 3 + kw) * Cp:(kh * 3 + kw + 1) * Cp, :]
            d = jnp.dot(tap, wt, preferred_element_type=jnp.float32)
            acc = d if acc is None else acc + d

    y3 = acc.reshape(H, OW_c, Op)
    if OW_c != W:
        col = jax.lax.broadcasted_iota(jnp.int32, y3.shape, 1)
        yv = jnp.where(col < W, y3, 0.0)
        out = y3[:, :W, :]
    else:
        yv = y3
        out = y3
    sum_ref[...] = jnp.sum(yv, axis=(0, 1), keepdims=True)
    sq_ref[...] = jnp.sum(yv * yv, axis=(0, 1), keepdims=True)
    o_ref[...] = out.astype(o_ref.dtype)[None]


def conv3x3_bn_relu(x_slab, M, N, H, W, Cp_in, scale_p, shift_p, wp):
    """BN+ReLU+Conv3x3(s1,p1) on a (rows, Cp_in) bf16 activation slab."""
    Cp, Op = wp["Cp"], wp["w"].shape[1]
    assert Cp == Cp_in and wp["KH"] == 3
    OW_c = _ceil_to(W, 8)
    wextra = OW_c - W
    img = x_slab[:M].reshape(N, H, W, Cp_in)
    img = jnp.pad(img, ((0, 0), (1, 1), (1, 1 + wextra), (0, 0)))
    Hp, Wpc = H + 2, OW_c + 2

    kernel = functools.partial(_conv3x3_kernel, H=H, W=W, OW_c=OW_c,
                               Cp=Cp, Op=Op)
    out, ssum, ssq = pl.pallas_call(
        kernel,
        out_shape=(jax.ShapeDtypeStruct((N, H, W, Op), jnp.bfloat16),
                   jax.ShapeDtypeStruct((N, 1, Op), jnp.float32),
                   jax.ShapeDtypeStruct((N, 1, Op), jnp.float32)),
        grid=(N,),
        in_specs=[pl.BlockSpec((1, Hp, Wpc, Cp), lambda n: (n, 0, 0, 0)),
                  pl.BlockSpec((9 * Cp, Op), lambda n: (0, 0)),
                  pl.BlockSpec((1, Cp), lambda n: (0, 0)),
                  pl.BlockSpec((1, Cp), lambda n: (0, 0))],
        out_specs=(pl.BlockSpec((1, H, W, Op), lambda n: (n, 0, 0, 0)),
                   pl.BlockSpec((1, 1, Op), lambda n: (n, 0, 0)),
                   pl.BlockSpec((1, 1, Op), lambda n: (n, 0, 0))),
        compiler_params=pltpu.CompilerParams(
            dimension_semantics=("parallel",)),
    )(img, wp["w"], scale_p.reshape(1, Cp), shift_p.reshape(1, Cp))
    return out, jnp.sum(ssum, axis=(0, 1)), jnp.sum(ssq, axis=(0, 1))


# ------------------------ elementwise / pooling kernels --------------------- #

def _scale_shift_relu_kernel(x_ref, s_ref, t_ref, o_ref):
    x = x_ref[...].astype(jnp.float32)
    o_ref[...] = jnp.maximum(x * s_ref[...] + t_ref[...], 0.0).astype(o_ref.dtype)


def scale_shift_relu(x2p, scale_p, shift_p, out_dtype=jnp.bfloat16):
    """Standalone fused BN-apply + ReLU, tiled over rows (bf16 streaming)."""
    M0, Cp = x2p.shape
    tile = _row_tile(Cp, 1, x2p.dtype.itemsize, M0)
    Mp = _ceil_to(M0, tile)
    if Mp != M0:
        x2p = jnp.pad(x2p, ((0, Mp - M0), (0, 0)))
    return pl.pallas_call(
        _scale_shift_relu_kernel,
        out_shape=jax.ShapeDtypeStruct((Mp, Cp), out_dtype),
        grid=(Mp // tile,),
        in_specs=[pl.BlockSpec((tile, Cp), lambda i: (i, 0)),
                  pl.BlockSpec((1, Cp), lambda i: (0, 0)),
                  pl.BlockSpec((1, Cp), lambda i: (0, 0))],
        out_specs=pl.BlockSpec((tile, Cp), lambda i: (i, 0)),
        compiler_params=pltpu.CompilerParams(
            dimension_semantics=("parallel",)),
    )(x2p, scale_p, shift_p)


def _stack_reduce_kernel(*refs, op, taps, stats, tile, m_true, mask_rows):
    x_ref, o_ref = refs[0], refs[1]
    acc = x_ref[0].astype(jnp.float32)
    for t in range(1, taps):                     # small static tap count
        v = x_ref[t].astype(jnp.float32)
        acc = jnp.maximum(acc, v) if op == "max" else acc + v
    if op == "mean":
        acc = acc * (1.0 / taps)
    o_ref[...] = acc.astype(o_ref.dtype)
    if stats:
        y = acc
        if mask_rows:
            i = pl.program_id(0)
            row = jax.lax.broadcasted_iota(jnp.int32, y.shape, 0) + i * tile
            y = jnp.where(row < m_true, y, 0.0)
        refs[2][...] = jnp.sum(y, axis=0, keepdims=True)[None]
        refs[3][...] = jnp.sum(y * y, axis=0, keepdims=True)[None]


def pallas_stack_reduce(stacked, op, *, stats=False, out_dtype=jnp.bfloat16):
    """Reduce (K, M, C) over the tap axis -> (Mp, Cp); optional batch stats."""
    K, M, C = stacked.shape
    Cp = _ceil_to(C, LANE)
    tile = _row_tile(Cp, K, stacked.dtype.itemsize, M)
    Mp = _ceil_to(M, tile)
    if (Mp, Cp) != (M, C):
        stacked = jnp.pad(stacked, ((0, 0), (0, Mp - M), (0, Cp - C)))
    nt = Mp // tile

    out_shape = [jax.ShapeDtypeStruct((Mp, Cp), out_dtype)]
    out_specs = [pl.BlockSpec((tile, Cp), lambda i: (i, 0))]
    if stats:
        out_shape += [jax.ShapeDtypeStruct((nt, 1, Cp), jnp.float32)] * 2
        out_specs += [pl.BlockSpec((1, 1, Cp), lambda i: (i, 0, 0))] * 2

    kernel = functools.partial(_stack_reduce_kernel, op=op, taps=K, stats=stats,
                               tile=tile, m_true=M, mask_rows=(Mp != M))
    res = pl.pallas_call(
        kernel,
        out_shape=tuple(out_shape) if stats else out_shape[0],
        grid=(nt,),
        in_specs=[pl.BlockSpec((K, tile, Cp), lambda i: (0, i, 0))],
        out_specs=tuple(out_specs) if stats else out_specs[0],
        compiler_params=pltpu.CompilerParams(
            dimension_semantics=("parallel",)),
    )(stacked)
    if stats:
        out, s, q = res
        return out, jnp.sum(s, axis=(0, 1)), jnp.sum(q, axis=(0, 1))
    return res


# --------------------------- weight packing / params ------------------------ #

def pack_conv_weight(w_oihw):
    """(O,C,KH,KW) -> pre-transposed, lane-padded bf16 (ceil(KH*KW*C), Op)."""
    O, C, KH, KW = w_oihw.shape
    k = KH * KW * C
    b = jnp.transpose(w_oihw, (2, 3, 1, 0)).reshape(k, O)
    b = _pad2d(b, _ceil_to(k, LANE), _ceil_to(O, LANE)).astype(jnp.bfloat16)
    return {"w": b, "O": O, "C": C, "KH": KH, "KW": KW}


def pack_conv_weight_grouped(w_oihw):
    """(O,C,KH,KW) -> (KH*KW*Cp, Op) bf16 with per-tap channel padding, for the
    fused 3x3-conv kernel whose activation taps carry Cp (=128k) lanes."""
    O, C, KH, KW = w_oihw.shape
    Cp, Op = _ceil_to(C, LANE), _ceil_to(O, LANE)
    b = jnp.transpose(w_oihw, (2, 3, 1, 0))                    # (KH,KW,C,O)
    b = jnp.pad(b, ((0, 0), (0, 0), (0, Cp - C), (0, Op - O)))
    b = b.reshape(KH * KW * Cp, Op).astype(jnp.bfloat16)
    return {"w": b, "O": O, "C": C, "Cp": Cp, "KH": KH, "KW": KW}


def init_params(seed, init_channel, growth_rate, layer_sequence):
    key = jax.random.PRNGKey(seed)

    def nk():
        nonlocal key
        key, sub = jax.random.split(key)
        return sub

    def conv_w(o, i, k, grouped=False):
        fan_in = float(i * k * k)
        w = jax.random.normal(nk(), (o, i, k, k), jnp.float32) / fan_in ** 0.5
        return pack_conv_weight_grouped(w) if grouped else pack_conv_weight(w)

    def bn(c):
        return {"gamma": 1.0 + 0.05 * jax.random.normal(nk(), (c,), jnp.float32),
                "beta": 0.05 * jax.random.normal(nk(), (c,), jnp.float32)}

    params = {"init_conv": conv_w(2 * growth_rate, init_channel, 7),
              "init_bn": bn(2 * growth_rate)}
    blocks = []
    nin = 2 * growth_rate
    n_blocks = len(layer_sequence)
    for bi, n_l in enumerate(layer_sequence):
        layers = []
        for li in range(n_l):
            inf = nin + growth_rate * li
            layers.append({"bn1": bn(inf),
                           "conv1": conv_w(4 * growth_rate, inf, 1),
                           "bn2": bn(4 * growth_rate),
                           "conv2": conv_w(growth_rate, 4 * growth_rate, 3,
                                           grouped=True)})
        blocks.append({"type": "dense", "layers": layers})
        nin += growth_rate * n_l
        if bi + 1 != n_blocks:
            blocks.append({"type": "transition", "bn": bn(nin),
                           "conv": conv_w(nin // 2, nin, 1)})
            nin //= 2
    params["blocks"] = blocks

    fw = jax.random.normal(nk(), (nin, 1000), jnp.float32) / nin ** 0.5
    params["fc_w"] = _pad2d(fw, _ceil_to(nin, LANE),
                            _ceil_to(1000, LANE)).astype(jnp.bfloat16)
    params["fc_b"] = jnp.pad(
        0.01 * jax.random.normal(nk(), (1000,), jnp.float32),
        (0, _ceil_to(1000, LANE) - 1000))
    params["fc_out"] = 1000
    return params


# ------------------------------- forward pass ------------------------------- #

def conv_im2col(x, wp, stride, padding, stats=False):
    """NHWC conv via bf16 im2col feeding the tiled MXU matmul (stem only,
    where C=3 keeps the expanded patches tiny)."""
    N, H, W, C = x.shape
    KH, KW = wp["KH"], wp["KW"]
    OH = (H + 2 * padding - KH) // stride + 1
    OW = (W + 2 * padding - KW) // stride + 1
    xp = jnp.pad(x, ((0, 0), (padding, padding), (padding, padding), (0, 0)))
    cols = [xp[:, i:i + stride * OH:stride, j:j + stride * OW:stride, :]
            for i in range(KH) for j in range(KW)]
    a = jnp.stack(cols, axis=3).reshape(N * OH * OW, KH * KW * C)
    a = a.astype(jnp.bfloat16)
    res = fused_matmul(a, wp["w"], stats=stats, out_dtype=jnp.bfloat16)
    return res, N * OH * OW, OH, OW


def densenet_forward(params, x_nchw):
    x = jnp.transpose(x_nchw.astype(jnp.float32), (0, 2, 3, 1))   # NCHW -> NHWC
    N = x.shape[0]

    # --- stem: 7x7/2 conv (+fused batch stats), BN+ReLU, 3x3/2 maxpool -------
    wp = params["init_conv"]
    (y, ysum, ysq), M0, H0, W0 = conv_im2col(x, wp, stride=2, padding=3,
                                             stats=True)
    Cp0 = y.shape[1]
    C0 = wp["O"]
    sc, sh = _bn_coeffs(ysum[:C0], ysq[:C0], params["init_bn"]["gamma"],
                        params["init_bn"]["beta"], M0)
    y = scale_shift_relu(y, _pad_vec(sc, Cp0), _pad_vec(sh, Cp0))
    y = y[:M0].reshape(N, H0, W0, Cp0)

    OH, OW = (H0 + 2 - 3) // 2 + 1, (W0 + 2 - 3) // 2 + 1
    xp = jnp.pad(y, ((0, 0), (1, 1), (1, 1), (0, 0)),
                 constant_values=-jnp.inf)
    taps = jnp.stack([xp[:, i:i + 2 * OH:2, j:j + 2 * OW:2, :]
                      .reshape(N * OH * OW, Cp0)
                      for i in range(3) for j in range(3)], axis=0)
    M = N * OH * OW
    pooled, psum, psq = pallas_stack_reduce(taps, "max", stats=True)
    feat = pooled[:M, :C0]                    # (M, C) bf16 feature slab
    run_sum, run_sq = psum[:C0], psq[:C0]     # carried batch stats of `feat`
    H, W = OH, OW
    # TODO(synk): fuse the pooling taps (and the stem im2col) into their
    # kernels instead of materializing the strided slices in HBM.

    # --- dense blocks / transitions ------------------------------------------
    for blk in params["blocks"]:
        if blk["type"] == "dense":
            for layer in blk["layers"]:
                Cin = feat.shape[1]
                Kp = _ceil_to(Cin, LANE)
                sc, sh = _bn_coeffs(run_sum, run_sq, layer["bn1"]["gamma"],
                                    layer["bn1"]["beta"], M)
                w1 = layer["conv1"]
                y1, s1, q1 = fused_matmul(feat, w1["w"],
                                          scale=_pad_vec(sc, Kp),
                                          shift=_pad_vec(sh, Kp), stats=True)
                O1, Cp1 = w1["O"], y1.shape[1]
                sc2, sh2 = _bn_coeffs(s1[:O1], q1[:O1], layer["bn2"]["gamma"],
                                      layer["bn2"]["beta"], M)
                w2 = layer["conv2"]
                y2, s2, q2 = conv3x3_bn_relu(y1, M, N, H, W, Cp1,
                                             _pad_vec(sc2, Cp1),
                                             _pad_vec(sh2, Cp1), w2)
                gr = w2["O"]
                y2 = y2.reshape(M, y2.shape[-1])[:, :gr]
                feat = jnp.concatenate([feat, y2], axis=1)     # torch.cat dim=1
                run_sum = jnp.concatenate([run_sum, s2[:gr]])
                run_sq = jnp.concatenate([run_sq, q2[:gr]])
                # TODO(synk): write growth channels into a preallocated,
                # lane-aligned feature slab via input_output_aliases instead of
                # re-concatenating (O(L^2) HBM copies) for growth_rate >= 128.
        else:  # transition: BN+ReLU fused into the 1x1 conv, then 2x2 avg-pool
            Cin = feat.shape[1]
            Kp = _ceil_to(Cin, LANE)
            sc, sh = _bn_coeffs(run_sum, run_sq, blk["bn"]["gamma"],
                                blk["bn"]["beta"], M)
            wt = blk["conv"]
            yt = fused_matmul(feat, wt["w"], scale=_pad_vec(sc, Kp),
                              shift=_pad_vec(sh, Kp))
            Ct = wt["O"]
            yt = yt[:M, :Ct].reshape(N, H, W, Ct)
            OH, OW = H // 2, W // 2
            taps = jnp.stack([yt[:, i::2, j::2, :].reshape(N * OH * OW, Ct)
                              for i in range(2) for j in range(2)], axis=0)
            M = N * OH * OW
            pooled, psum, psq = pallas_stack_reduce(taps, "mean", stats=True)
            feat = pooled[:M, :Ct]
            run_sum, run_sq = psum[:Ct], psq[:Ct]
            H, W = OH, OW

    # --- AvgPool2d(7) + flatten + FC ------------------------------------------
    assert H == 7 and W == 7, "config must produce 7x7 before final avgpool"
    C = feat.shape[1]
    stacked = jnp.transpose(feat.reshape(N, H * W, C), (1, 0, 2))   # (49, N, C)
    pooled = pallas_stack_reduce(stacked, "mean")
    pooled = pooled[:N, :C]
    logits = fused_matmul(pooled, params["fc_w"], bias=params["fc_b"],
                          out_dtype=jnp.float32)
    return logits[:N, :params["fc_out"]]
    # TODO(synk): training-mode BatchNorm running_mean/running_var buffer
    # updates are a side effect not reproduced (they do not affect the output).


# ----------------------------------- main ----------------------------------- #

if __name__ == "__main__":
    # Small config: init_channel=3, growth_rate=8, layer_sequence=(2, 2).
    # 56x56 -> init conv s2 -> 28 -> maxpool s2 -> 14 -> transition -> 7
    # -> AvgPool2d(7) -> flatten -> fc(32 -> 1000).
    x = jax.random.normal(jax.random.PRNGKey(0), (2, 3, 56, 56), jnp.float32)
    params = init_params(seed=0, init_channel=3, growth_rate=8,
                         layer_sequence=(2, 2))
    out = densenet_forward(params, x)
    out = jax.block_until_ready(out)
    assert out.shape == (2, 1000) and out.dtype == jnp.float32
    assert bool(jnp.all(jnp.isfinite(out)))
    print("KERNEL_OK")
</pallas_src>

<mosaic_0001>
module attributes {stable_mosaic.version = 11 : i64} {
  func.func @_matmul_kernel(%arg0: i32, %arg1: i32, %arg2: i32, %arg3: memref<512x256xbf16, #tpu.memory_space<vmem>>, %arg4: memref<256x128xbf16, #tpu.memory_space<vmem>>, %arg5: memref<512x128xbf16, #tpu.memory_space<vmem>>, %arg6: memref<1x1x128xf32, #tpu.memory_space<vmem>>, %arg7: memref<1x1x128xf32, #tpu.memory_space<vmem>>, %arg8: memref<512x128xf32, #tpu.memory_space<vmem>>) attributes {dimension_semantics = [#tpu.dimension_semantics<parallel>, #tpu.dimension_semantics<parallel>, #tpu.dimension_semantics<arbitrary>], iteration_bounds = array<i64: 4, 1, 1>, scalar_prefetch = 0 : i64, scratch_operands = 1 : i64, tpu.core_type = #tpu.core_type<tc>, window_params = [{transform_indices = @transform_0, window_bounds = array<i64: 512, 256>}, {transform_indices = @transform_1, window_bounds = array<i64: 256, 128>}, {transform_indices = @transform_2, window_bounds = array<i64: 512, 128>}, {transform_indices = @transform_3, window_bounds = array<i64: 1, 1, 128>}, {transform_indices = @transform_4, window_bounds = array<i64: 1, 1, 128>}]} {
    %c0_i32 = arith.constant 0 : i32
    %0 = arith.cmpi eq, %arg2, %c0_i32 : i32
    %1 = arith.extui %0 : i1 to i32
    %c0_i32_0 = arith.constant 0 : i32
    %2 = arith.cmpi ne, %1, %c0_i32_0 : i32
    scf.if %2 {
      %cst_10 = arith.constant 0.000000e+00 : f32
      %12 = vector.broadcast %cst_10 : f32 to vector<512x128xf32>
      %c0_11 = arith.constant 0 : index
      %c0_12 = arith.constant 0 : index
      %13 = vector.load %arg8[%c0_11, %c0_12] : memref<512x128xf32, #tpu.memory_space<vmem>>, vector<512x128xf32>
      tpu.vector_store %arg8[%c0_11, %c0_12], %12 {strides = array<i32>} : memref<512x128xf32, #tpu.memory_space<vmem>>, vector<512x128xf32>,
    } else {
    }
    %c0 = arith.constant 0 : index
    %c0_1 = arith.constant 0 : index
    %3 = vector.load %arg3[%c0, %c0_1] : memref<512x256xbf16, #tpu.memory_space<vmem>>, vector<512x256xbf16>
    %c0_2 = arith.constant 0 : index
    %c0_3 = arith.constant 0 : index
    %4 = vector.load %arg8[%c0_2, %c0_3] : memref<512x128xf32, #tpu.memory_space<vmem>>, vector<512x128xf32>
    %c0_4 = arith.constant 0 : index
    %c0_5 = arith.constant 0 : index
    %5 = vector.load %arg4[%c0_4, %c0_5] : memref<256x128xbf16, #tpu.memory_space<vmem>>, vector<256x128xbf16>
    %cst = arith.constant dense<0.000000e+00> : vector<512x128xf32>
    %6 = tpu.matmul %3, %5, %cst {dimension_numbers = #tpu.dot_dimension_numbers<[1], [0], [0], [1], [0, 0, 1, 1], [], []>} : vector<512x256xbf16>, vector<256x128xbf16>, vector<512x128xf32> -> vector<512x128xf32>
    %7 = arith.addf %4, %6 : vector<512x128xf32>
    %c0_6 = arith.constant 0 : index
    %c0_7 = arith.constant 0 : index
    %8 = vector.load %arg8[%c0_6, %c0_7] : memref<512x128xf32, #tpu.memory_space<vmem>>, vector<512x128xf32>
    tpu.vector_store %arg8[%c0_6, %c0_7], %7 {strides = array<i32>} : memref<512x128xf32, #tpu.memory_space<vmem>>, vector<512x128xf32>,
    %c0_i32_8 = arith.constant 0 : i32
    %9 = arith.cmpi eq, %arg2, %c0_i32_8 : i32
    %10 = arith.extui %9 : i1 to i32
    %c0_i32_9 = arith.constant 0 : i32
    %11 = arith.cmpi ne, %10, %c0_i32_9 : i32
    scf.if %11 {
      %c0_10 = arith.constant 0 : index
      %c0_11 = arith.constant 0 : index
      %12 = vector.load %arg8[%c0_10, %c0_11] : memref<512x128xf32, #tpu.memory_space<vmem>>, vector<512x128xf32>
      %13 = arith.truncf %12 : vector<512x128xf32> to vector<512x128xbf16>
      %c0_12 = arith.constant 0 : index
      %c0_13 = arith.constant 0 : index
      %14 = vector.load %arg5[%c0_12, %c0_13] : memref<512x128xbf16, #tpu.memory_space<vmem>>, vector<512x128xbf16>
      tpu.vector_store %arg5[%c0_12, %c0_13], %13 {strides = array<i32>} : memref<512x128xbf16, #tpu.memory_space<vmem>>, vector<512x128xbf16>,
      %15 = tpu.iota {dimensions = array<i32: 0>} : vector<512x128xi32>
      %c512_i32 = arith.constant 512 : i32
      %16 = arith.muli %arg0, %c512_i32 : i32
      %17 = vector.broadcast %16 : i32 to vector<512x128xi32>
      %18 = arith.addi %15, %17 : vector<512x128xi32>
      %c1568_i32 = arith.constant 1568 : i32
      %19 = vector.broadcast %c1568_i32 : i32 to vector<512x128xi32>
      %20 = arith.cmpi slt, %18, %19 : vector<512x128xi32>
      %cst_14 = arith.constant 0.000000e+00 : f32
      %21 = vector.broadcast %cst_14 : f32 to vector<512x128xf32>
      %22 = arith.select %20, %12, %21 : vector<512x128xi1>, vector<512x128xf32>
      %cst_15 = arith.constant dense<0.000000e+00> : vector<128xf32>
      %23 = vector.multi_reduction <add>, %22, %cst_15 [0] : vector<512x128xf32> to vector<128xf32>
      %24 = vector.shape_cast %23 : vector<128xf32> to vector<1x128xf32>
      %25 = vector.shape_cast %24 : vector<1x128xf32> to vector<1x1x128xf32>
      %c0_16 = arith.constant 0 : index
      %c0_17 = arith.constant 0 : index
      %c0_18 = arith.constant 0 : index
      %26 = vector.load %arg6[%c0_16, %c0_17, %c0_18] : memref<1x1x128xf32, #tpu.memory_space<vmem>>, vector<1x1x128xf32>
      tpu.vector_store %arg6[%c0_16, %c0_17, %c0_18], %25 {strides = array<i32>} : memref<1x1x128xf32, #tpu.memory_space<vmem>>, vector<1x1x128xf32>,
      %27 = arith.mulf %22, %22 : vector<512x128xf32>
      %cst_19 = arith.constant dense<0.000000e+00> : vector<128xf32>
      %28 = vector.multi_reduction <add>, %27, %cst_19 [0] : vector<512x128xf32> to vector<128xf32>
      %29 = vector.shape_cast %28 : vector<128xf32> to vector<1x128xf32>
      %30 = vector.shape_cast %29 : vector<1x128xf32> to vector<1x1x128xf32>
      %c0_20 = arith.constant 0 : index
      %c0_21 = arith.constant 0 : index
      %c0_22 = arith.constant 0 : index
      %31 = vector.load %arg7[%c0_20, %c0_21, %c0_22] : memref<1x1x128xf32, #tpu.memory_space<vmem>>, vector<1x1x128xf32>
      tpu.vector_store %arg7[%c0_20, %c0_21, %c0_22], %30 {strides = array<i32>} : memref<1x1x128xf32, #tpu.memory_space<vmem>>, vector<1x1x128xf32>,
    } else {
    }
    return
  }
  func.func @transform_0(%arg0: i32, %arg1: i32, %arg2: i32) -> (i32, i32) {
    %c0_i32 = arith.constant 0 : i32
    return %arg0, %arg2 : i32, i32
  }
  func.func @transform_1(%arg0: i32, %arg1: i32, %arg2: i32) -> (i32, i32) {
    %c0_i32 = arith.constant 0 : i32
    return %arg2, %arg1 : i32, i32
  }
  func.func @transform_2(%arg0: i32, %arg1: i32, %arg2: i32) -> (i32, i32) {
    %c0_i32 = arith.constant 0 : i32
    return %arg0, %arg1 : i32, i32
  }
  func.func @transform_3(%arg0: i32, %arg1: i32, %arg2: i32) -> (i32, i32, i32) {
    %c0_i32 = arith.constant 0 : i32
    %c0_i32_0 = arith.constant 0 : i32
    return %arg0, %c0_i32, %arg1 : i32, i32, i32
  }
  func.func @transform_4(%arg0: i32, %arg1: i32, %arg2: i32) -> (i32, i32, i32) {
    %c0_i32 = arith.constant 0 : i32
    %c0_i32_0 = arith.constant 0 : i32
    return %arg0, %c0_i32, %arg1 : i32, i32, i32
  }
}

</mosaic_0001>

<bundles_post_ra>
// kernel: tpu_custom_call.1
= control target key start
LH: loop header
LB: loop body
LE: loop exit
PB: predicated region body
PF: predicated region fallthrough
CT: control target
= control target key end

     0   :  { %10 = vsyncpa [#allocation4], 0  ;;  %s4006_s0 = inlined_call_operand.hbm [shape: bf16[2048,256], index: 0, kind: input, shape index: {}]   ;;  %s4007_s1 = inlined_call_operand.hbm [shape: bf16[256,128], index: 1, kind: input, shape index: {}]   ;;  %s4008_s2 = inlined_call_operand.hbm [shape: bf16[2048,128], index: 2, kind: output, shape index: {0}]   ;;  %s4009_s3 = inlined_call_operand.hbm [shape: f32[4,1,128], index: 3, kind: output, shape index: {1}]   ;;  %s4010_s4 = inlined_call_operand.hbm [shape: f32[4,1,128], index: 4, kind: output, shape index: {2}]  }
   0x1   :  { %12 = vsyncpa [#allocation4 + $0x1], 0 }
   0x2   :  { %13 = vsyncpa [#allocation7], 0 }
   0x3   :  { %14 = vsyncpa [#allocation5], 0 }
   0x4   :  { %16 = vsyncpa [#allocation5 + $0x1], 0 }
   0x5   :  { %17 = vsyncpa [#allocation10], 0 }
   0x6   :  { %19 = vsyncpa [#allocation10 + $0x1], 0  ;;  %s3313_s15 = smov 0   ;;  %s3315_s16 = smov 0  }
   0x7   :  { %s3317_s17 = smov 0   ;;  %s3319_s18 = smov 0  }
   0x8   :  { %s3321_s19 = smov 0   ;;  %s3323_s20 = smov 0  }
   0x9 LB: > { %s3344_s21 = sadd.s32 4294967295, %s3274_s20   ;;  %s2414_s22 = sadd.s32 4294967294, %s3274_s20   ;;  %s3274_s20 = sphi %s3323_s20, %s25_s20   ;;  %s3270_s19 = sphi %s3321_s19, %s4031_s19   ;;  %s3266_s18 = sphi %s3319_s18, %s4030_s18   ;;  %s3262_s17 = sphi %s3317_s17, %s4029_s17   ;;  %s3258_s16 = sphi %s3315_s16, %s4028_s16   ;;  %s3254_s15 = sphi %s3313_s15, %s4027_s15  }
   0xa   : > { %p66_p0 = scmp.ne.s32.totalorder %s3258_s16, %s3254_s15  ;;  %p4011_p1 = scmp.eq.s32.totalorder %s3344_s21, 0 }
   0xb   : > { %p126_p3 = scmp.eq.s32.totalorder %s2414_s22, 3  ;;  %p2415_p5 = scmp.ge.s32.totalorder %s3274_s20, 1 }
   0xc   : > { %p3355_p4 = por %p4011_p1, %p66_p0  ;;  %p189_p7 = scmp.lt.s32.totalorder %s3274_s20, 5 }
   0xd   : > { %p3360_p6 = por %p126_p3, %p66_p0  ;;  %s3276_s26 = smov [#allocation6]  }
   0xe   : > { %s4014_s23 = scalar_select %p3355_p4, 1, 0 }
   0xf   : > { %s4015_s24 = scalar_select %p3360_p6, 1, 0 }
  0x10   : > { %p3365_p8 = pnand %p2415_p5, %p189_p7  ;;  %s205_s27 = sshll.u32 %s3276_s26, 4  ;;  %s206_s27 = int_to_ptr.vmem [resolvable:$true] %s205_s27 }
  0x11   : > { %s44_s29 = sadd.s32 1, %s3270_s19  ;;  %s3070_s6 = scalar_lea.hbm %s4007_s1, 2048 }
  0x12   : > { %s4016_s25 = scalar_select %p3365_p8, 1, 0 }
  0x13   : > { %p2880_p9 = pneg %p3365_p8  ;;  %p3071_p11 = scmp.ne.s32.totalorder %s4007_s1, %s3070_s6 }
  0x14   : > { %p3077_p3 = scmp.lt.u32.totalorder %s3070_s6, %s4007_s1 }
  0x15   : > { %p3373_p10 = pnand %p2880_p9, %p4011_p1 }
  0x17   : > { %p3072_p12 = pneg %p3373_p10 }
  0x19   : > { %p3073_p13 = pnand %p3072_p12, %p3071_p11 }
  0x1b   : > { %p3074_p0 = pneg %p3073_p13 }
  0x1d   : > { %p3079_p5 = pnand %p3077_p3, %p3074_p0 }
  0x1f   : > { %3082 = shalt.err (!%p3079_p5)
}
  0x20   : > { %s3083_s11 = scalar_lea.vmem %s206_s27, 2048  ;;  %p3091_p2 = scmp.lt.s32.totalorder %s206_s27, %s206_s27 }
  0x21   : > { %p3084_p7 = scmp.ne.s32.totalorder %s206_s27, %s3083_s11  ;;  %p3092_p6 = scmp.lt.s32.totalorder %s3083_s11, %s3083_s11 }
  0x23   : > { %p3086_p9 = pnand %p3084_p7, %p3072_p12  ;;  %p3093_p4 = por %p3092_p6, %p3091_p2 }
  0x25   : > { %p3087_p1 = pneg %p3086_p9 }
  0x27   : > { %p3094_p8 = pnand %p3093_p4, %p3087_p1 }
  0x29   : > { %3097 = shalt.err (!%p3094_p8)
}
  0x2a   : > { %s3277_s12 = smov 64   ;;  %s3278_s13 = smov 4  }
  0x2b   : > { %2883 = dma.hbm_to_vmem [thread:$0]  (!%p3373_p10), %s4007_s1, 2048, %s206_s27, [#allocation7], %s3277_s12, %s3277_s12, %s3278_s13  }
  0x2c   : > { %p46_p1 = scmp.ge.s32.totalorder %s44_s29, 4  ;;  %s53_s30 = sadd.s32 1, %s3262_s17 }
  0x2d   : > { %p60_p2 = scmp.ne.s32.totalorder %s3262_s17, %s3258_s16  ;;  %p61_p4 = scmp.eq.s32.totalorder %s3274_s20, 0 }
  0x2e   : > { %s4033_s29 = smov (%p46_p1, %s44_s29), 0  ;;  %p4019_p8 = scmp.eq.s32.totalorder %s3344_s21, 3 }
  0x2f   : > { %p3400_p6 = por %p61_p4, %p60_p2  ;;  %s48_s28 = ssub.s32 %s3270_s19, %s4033_s29 }
  0x30   : > { %p3406_p11 = por %p4019_p8, %p60_p2  ;;  %p2899_p12 = scmp.lt.s32.totalorder %s3274_s20, 4 }
  0x31   : > { %p51_p10 = scmp.eq.s32.totalorder %s48_s28, 0  ;;  %s219_s27 = sand.u32 1, %s3262_s17  }
  0x32   : > { %s2418_s7 = sshll.u32 %s219_s27, 9  ;;  %s2579_s9 = sshll.u32 %s3270_s19, 13 }
  0x33   : > { %s3415_s8 = scalar_select %p51_p10, %s3262_s17, %s53_s30  }
  0x34   : > { %s3421_s12 = scalar_lea.hbm %s4006_s0, %s2579_s9  ;;  %s223_s13 = scalar_lea.vmem [#allocation3], %s2418_s7 }
  0x35   : > { %s233_s14 = sshll.u32 %s223_s13, 4  ;;  %p3427_p13 = pnand %p2899_p12, %p3400_p6  ;;  %s3423_s14 = int_to_ptr.vmem [resolvable:$true] %s233_s14 }
  0x36   : > { %s3431_s30 = scalar_lea.sflag [#allocation4], %s219_s27  ;;  %s3098_s28 = scalar_lea.hbm %s3421_s12, 8192 }
  0x37   : > { %p3099_p0 = scmp.ne.s32.totalorder %s3421_s12, %s3098_s28  ;;  %p3100_p3 = pneg %p3427_p13 }
  0x38   : > { %s3103_s5 = scalar_lea.hbm %s4006_s0, 32768  ;;  %p3104_p9 = scmp.lt.u32.totalorder %s3421_s12, %s4006_s0 }
  0x39   : > { %p3101_p5 = pnand %p3100_p3, %p3099_p0  ;;  %p3105_p1 = scmp.lt.u32.totalorder %s3103_s5, %s3098_s28 }
  0x3a   : > { %p3107_p4 = scmp.lt.u32.totalorder %s3098_s28, %s3421_s12 }
  0x3b   : > { %p3102_p7 = pneg %p3101_p5  ;;  %p3106_p2 = por %p3105_p1, %p3104_p9 }
  0x3d   : > { %p3108_p6 = por %p3107_p4, %p3106_p2 }
  0x3f   : > { %p3109_p8 = pnand %p3108_p6, %p3102_p7 }
  0x41   : > { %3112 = shalt.err (!%p3109_p8)
}
  0x42   : > { %s3113_s27 = scalar_lea.vmem %s3423_s14, 8192  ;;  %s3279_s13 = smov [#allocation3]  }
  0x43   : > { %p3114_p12 = scmp.ne.s32.totalorder %s3423_s14, %s3113_s27  ;;  %s3118_s7 = sshll.u32 %s3279_s13, 4  ;;  %s3119_s7 = int_to_ptr.vmem [resolvable:$false] %s3118_s7 }
  0x44   : > { %s3120_s9 = scalar_lea.vmem %s3119_s7, 16384  ;;  %p3121_p5 = scmp.lt.s32.totalorder %s3423_s14, %s3119_s7 }
  0x45   : > { %p3116_p10 = pnand %p3114_p12, %p3100_p3  ;;  %p3122_p9 = scmp.lt.s32.totalorder %s3120_s9, %s3113_s27 }
  0x47   : > { %p3117_p0 = pneg %p3116_p10  ;;  %p3123_p1 = por %p3122_p9, %p3121_p5 }
  0x49   : > { %p3124_p2 = pnand %p3123_p1, %p3117_p0 }
  0x4b   : > { %3127 = shalt.err (!%p3124_p2)
}
  0x4c   : > { %s3280_s28 = smov 128   ;;  %s3281_s5 = smov 8  }
  0x4d   : > { %2887 = dma.hbm_to_vmem [thread:$0]  (!%p3427_p13), %s3421_s12, 8192, %s3423_s14, %s3431_s30, %s3280_s28, %s3280_s28, %s3281_s5  }
  0x4e   : > { %p4022_p3 = scmp.ne.s32.totalorder %s4016_s25, 0 }
  0x4f   : > { %s3462_s10 = sand.u32 (!%p4022_p3), 1, %s3258_s16   ;;  %p4023_p7 = scmp.ne.s32.totalorder (!%p4022_p3), %s4014_s23, 0 }
  0x50   : > { %245 = sbr.rel (%p4022_p3) target bundleno = 617 (0x269), region = 28  ;;  %s2423_s11 = sshll.u32 (!%p4022_p3), %s3462_s10, 9 }
  0x51   : > { %s248_s27 = scalar_lea.sflag (!%p4022_p3), [#allocation4], %s3462_s10  ;;  %s3466_s13 = scalar_lea.vmem (!%p4022_p3), [#allocation3], %s2423_s11 }
  0x57   : > { %3237 = dma.done.wait (%p4023_p7), %s248_s27, 8192  }
  0x58   : > { %3239 = vsyncadd (%p4023_p7), %s248_s27, 4294959104  ;;  %p4024_p13 = scmp.eq.s32.totalorder %s3344_s21, 0 }
  0x5a   : > { %3241 = dma.done.wait (%p4024_p13), [#allocation7], 2048   ;;  %p4025_p4 = pmov %p4024_p13 }
  0x5b   : > { %v3282_v0 = vmov 0   ;;  %v2958_v1 = vld [vmem:[#allocation6] sm:$0xff]   ;;  %v2959_v2 = vld [vmem:[#allocation6 + $0x8] sm:$0xff]   ;;  %v2960_v3 = vld [vmem:[#allocation6 + $0x10] sm:$0xff]   ;;  %s2570_s23 = sshll.u32 %s3266_s18, 9  ;;  %s2425_s25 = sshll.u32 %s3462_s10, 8 }
  0x5c   : > { %3243 = vsyncadd (%p4025_p4), [#allocation7], 4294965248  ;;  %937 = vmatprep.subr.bf16.mxu0 %v3282_v0  ;;  %2836 = vmatprep.subr.bf16.mxu1 %v3282_v0  ;;  %v2961_v4 = vld [vmem:[#allocation6 + $0x18] sm:$0xff]   ;;  %v2962_v5 = vld [vmem:[#allocation6 + $0x20] sm:$0xff]   ;;  %s3592_s12 = scalar_lea.vmem [#allocation8], %s2425_s25  ;;  %s2644_s14 = sshll.u32 %s3266_s18, 12 }
  0x5d   : > { %938 = vmatpush1.bf16.msra.mxu0 %v2958_v1  ;;  %2852 = vmatpush1.bf16.msra.mxu1 %v2958_v1  ;;  %v2976_v6 = vld [vmem:[%s3466_s13 + $0x4] ss:$8 sps:$4 sm:$0xff]   ;;  %v2964_v8 = vld [vmem:[#allocation6 + $0x30] sm:$0xff]   ;;  %v2965_v9 = vld [vmem:[#allocation6 + $0x38] sm:$0xff]   ;;  %s2227_s26 = sshll.u32 %s3592_s12, 4  ;;  %s3789_s9 = scalar_lea.hbm %s4008_s2, %s2644_s14  ;;  %s3791_s26 = int_to_ptr.vmem [resolvable:$true] %s2227_s26 }
  0x5e   : > { %939 = vmatprep.subr.bf16.mxu0 %v3282_v0  ;;  %2837 = vmatprep.subr.bf16.mxu1 %v3282_v0  ;;  %v2963_v7 = vld [vmem:[#allocation6 + $0x28] sm:$0xff]   ;;  %v2966_v11 = vld [vmem:[#allocation6 + $0x40] sm:$0xff]   ;;  %v2968_v13 = vld [vmem:[#allocation6 + $0x50] sm:$0xff]   ;;  %s2205_s28 = scalar_lea.sflag [#allocation5], %s3462_s10  ;;  %s3128_s5 = scalar_lea.vmem %s3791_s26, 4096 }
  0x5f   : > { %969 = vmatprep.mubr.bf16.mxu0 %v2976_v6  ;;  %v3000_v10 = vld [vmem:[%s3466_s13 + $0x104] ss:$8 sps:$4 sm:$0xff]   ;;  %v2969_v14 = vld [vmem:[#allocation6 + $0x58] sm:$0xff]   ;;  %v2972_v17 = vld [vmem:[#allocation6 + $0x70] sm:$0xff]   ;;  %p3129_p6 = scmp.ne.s32.totalorder %s3791_s26, %s3128_s5  ;;  %s3283_s11 = smov [#allocation8]  }
  0x60   : > { %1097 = vmatprep.mubr.bf16.mxu1 %v3000_v10  ;;  %v2967_v12 = vld [vmem:[#allocation6 + $0x48] sm:$0xff]   ;;  %v2970_v15 = vld [vmem:[#allocation6 + $0x60] sm:$0xff]   ;;  %v2973_v18 = vld [vmem:[#allocation6 + $0x78] sm:$0xff]   ;;  %s3132_s27 = sshll.u32 %s3283_s11, 4  ;;  %s3133_s27 = int_to_ptr.vmem [resolvable:$false] %s3132_s27 }
  0x61   : > { %940 = vmatpush1.bf16.msra.mxu0 %v2959_v2  ;;  %2853 = vmatpush1.bf16.msra.mxu1 %v2959_v2  ;;  %v2971_v16 = vld [vmem:[#allocation6 + $0x68] sm:$0xff]   ;;  %v2977_v21 = vld [vmem:[%s3466_s13 + $0x14] ss:$8 sps:$4 sm:$0xff]   ;;  %v2979_v23 = vld [vmem:[%s3466_s13 + $0x10] ss:$8 sps:$4 sm:$0xff]   ;;  %p3130_p8 = pnand %p3129_p6, %p3406_p11  ;;  %p3135_p10 = scmp.lt.s32.totalorder %s3791_s26, %s3133_s27 }
  0x62   : > { %941 = vmatprep.subr.bf16.mxu0 %v3282_v0  ;;  %2838 = vmatprep.subr.bf16.mxu1 %v3282_v0  ;;  %v2974_v19 = vld [vmem:[%s3466_s13] ss:$8 sps:$4 sm:$0xff]   ;;  %v3004_v22 = vld [vmem:[%s3466_s13 + $0x114] ss:$8 sps:$4 sm:$0xff]   ;;  %v3006_v24 = vld [vmem:[%s3466_s13 + $0x110] ss:$8 sps:$4 sm:$0xff]  }
  0x63   : > { %v2998_v20 = vld [vmem:[%s3466_s13 + $0x100] ss:$8 sps:$4 sm:$0xff]   ;;  %v2980_v25 = vld [vmem:[%s3466_s13 + $0x24] ss:$8 sps:$4 sm:$0xff]   ;;  %v2983_v29 = vld [vmem:[%s3466_s13 + $0x34] ss:$8 sps:$4 sm:$0xff]   ;;  %p3131_p12 = pneg %p3130_p8 }
  0x64   : > { %v3010_v26 = vld [vmem:[%s3466_s13 + $0x124] ss:$8 sps:$4 sm:$0xff]   ;;  %v2982_v27 = vld [vmem:[%s3466_s13 + $0x20] ss:$8 sps:$4 sm:$0xff]   ;;  %v3016_v30 = vld [vmem:[%s3466_s13 + $0x134] ss:$8 sps:$4 sm:$0xff]  }
  0x65   : > { %942 = vmatpush1.bf16.msra.mxu0 %v2960_v3  ;;  %2854 = vmatpush1.bf16.msra.mxu1 %v2960_v3  ;;  %v3012_v28 = vld [vmem:[%s3466_s13 + $0x120] ss:$8 sps:$4 sm:$0xff]   ;;  %v2985_v31 = vld [vmem:[%s3466_s13 + $0x30] ss:$8 sps:$4 sm:$0xff]   ;;  %v2986_v33 = vld [vmem:[%s3466_s13 + $0x44] ss:$8 sps:$4 sm:$0xff]  }
  0x66   : > { %943 = vmatprep.subr.bf16.mxu0 %v3282_v0  ;;  %2839 = vmatprep.subr.bf16.mxu1 %v3282_v0  ;;  %v3018_v32 = vld [vmem:[%s3466_s13 + $0x130] ss:$8 sps:$4 sm:$0xff]   ;;  %v3022_v34 = vld [vmem:[%s3466_s13 + $0x144] ss:$8 sps:$4 sm:$0xff]   ;;  %v2988_v35 = vld [vmem:[%s3466_s13 + $0x40] ss:$8 sps:$4 sm:$0xff]  }
  0x67   : > { %v3024_v36 = vld [vmem:[%s3466_s13 + $0x140] ss:$8 sps:$4 sm:$0xff]   ;;  %v2989_v37 = vld [vmem:[%s3466_s13 + $0x54] ss:$8 sps:$4 sm:$0xff]   ;;  %v2991_v39 = vld [vmem:[%s3466_s13 + $0x50] ss:$8 sps:$4 sm:$0xff]  }
  0x68   : > { %v3028_v38 = vld [vmem:[%s3466_s13 + $0x154] ss:$8 sps:$4 sm:$0xff]   ;;  %v3030_v40 = vld [vmem:[%s3466_s13 + $0x150] ss:$8 sps:$4 sm:$0xff]   ;;  %v2992_v41 = vld [vmem:[%s3466_s13 + $0x64] ss:$8 sps:$4 sm:$0xff]  }
  0x69   : > { %944 = vmatpush1.bf16.msra.mxu0 %v2961_v4  ;;  %2855 = vmatpush1.bf16.msra.mxu1 %v2961_v4  ;;  %v3034_v42 = vld [vmem:[%s3466_s13 + $0x164] ss:$8 sps:$4 sm:$0xff]   ;;  %v2994_v43 = vld [vmem:[%s3466_s13 + $0x60] ss:$8 sps:$4 sm:$0xff]   ;;  %v2995_v45 = vld [vmem:[%s3466_s13 + $0x74] ss:$8 sps:$4 sm:$0xff]  }
  0x6a   : > { %945 = vmatprep.subr.bf16.mxu0 %v3282_v0  ;;  %2840 = vmatprep.subr.bf16.mxu1 %v3282_v0  ;;  %v3036_v44 = vld [vmem:[%s3466_s13 + $0x160] ss:$8 sps:$4 sm:$0xff]   ;;  %v3040_v46 = vld [vmem:[%s3466_s13 + $0x174] ss:$8 sps:$4 sm:$0xff]   ;;  %v2997_v47 = vld [vmem:[%s3466_s13 + $0x70] ss:$8 sps:$4 sm:$0xff]  }
  0x6b   : > { %v3042_v48 = vld [vmem:[%s3466_s13 + $0x170] ss:$8 sps:$4 sm:$0xff]   ;;  %v3001_v49 = vld [vmem:[%s3466_s13 + $0x84] ss:$8 sps:$4 sm:$0xff]   ;;  %v3003_v51 = vld [vmem:[%s3466_s13 + $0x80] ss:$8 sps:$4 sm:$0xff]  }
  0x6c   : > { %v3046_v50 = vld [vmem:[%s3466_s13 + $0x184] ss:$8 sps:$4 sm:$0xff]   ;;  %v3048_v52 = vld [vmem:[%s3466_s13 + $0x180] ss:$8 sps:$4 sm:$0xff]   ;;  %v3007_v53 = vld [vmem:[%s3466_s13 + $0x94] ss:$8 sps:$4 sm:$0xff]  }
  0x6d   : > { %946 = vmatpush1.bf16.msra.mxu0 %v2962_v5  ;;  %2856 = vmatpush1.bf16.msra.mxu1 %v2962_v5  ;;  %v3049_v54 = vld [vmem:[%s3466_s13 + $0x194] ss:$8 sps:$4 sm:$0xff]   ;;  %v3009_v55 = vld [vmem:[%s3466_s13 + $0x90] ss:$8 sps:$4 sm:$0xff]   ;;  %v3013_v57 = vld [vmem:[%s3466_s13 + $0xa4] ss:$8 sps:$4 sm:$0xff]  }
  0x6e   : > { %947 = vmatprep.subr.bf16.mxu0 %v3282_v0  ;;  %2841 = vmatprep.subr.bf16.mxu1 %v3282_v0  ;;  %v3051_v56 = vld [vmem:[%s3466_s13 + $0x190] ss:$8 sps:$4 sm:$0xff]   ;;  %v3052_v58 = vld [vmem:[%s3466_s13 + $0x1a4] ss:$8 sps:$4 sm:$0xff]   ;;  %v3015_v59 = vld [vmem:[%s3466_s13 + $0xa0] ss:$8 sps:$4 sm:$0xff]  }
  0x6f   : > { %v3054_v60 = vld [vmem:[%s3466_s13 + $0x1a0] ss:$8 sps:$4 sm:$0xff]   ;;  %v3019_v61 = vld [vmem:[%s3466_s13 + $0xb4] ss:$8 sps:$4 sm:$0xff]   ;;  %v3021_v63 = vld [vmem:[%s3466_s13 + $0xb0] ss:$8 sps:$4 sm:$0xff]  }
  0x70   : > { %v3055_v62 = vld [vmem:[%s3466_s13 + $0x1b4] ss:$8 sps:$4 sm:$0xff]   ;;  %v3025_v1 = vld [vmem:[%s3466_s13 + $0xc4] ss:$8 sps:$4 sm:$0xff]   ;;  %v3027_v3 = vld [vmem:[%s3466_s13 + $0xc0] ss:$8 sps:$4 sm:$0xff]  }
  0x71   : > { %948 = vmatpush1.bf16.msra.mxu0 %v2963_v7  ;;  %2857 = vmatpush1.bf16.msra.mxu1 %v2963_v7  ;;  %v3058_v2 = vld [vmem:[%s3466_s13 + $0x1c4] ss:$8 sps:$4 sm:$0xff]   ;;  %v3060_v4 = vld [vmem:[%s3466_s13 + $0x1c0] ss:$8 sps:$4 sm:$0xff]   ;;  %v3031_v5 = vld [vmem:[%s3466_s13 + $0xd4] ss:$8 sps:$4 sm:$0xff]  }
  0x72   : > { %949 = vmatprep.subr.bf16.mxu0 %v3282_v0  ;;  %2842 = vmatprep.subr.bf16.mxu1 %v3282_v0  ;;  %v3061_v6 = vld [vmem:[%s3466_s13 + $0x1d4] ss:$8 sps:$4 sm:$0xff]   ;;  %v3033_v7 = vld [vmem:[%s3466_s13 + $0xd0] ss:$8 sps:$4 sm:$0xff]   ;;  %v3064_v10 = vld [vmem:[%s3466_s13 + $0x1e4] ss:$8 sps:$4 sm:$0xff]  }
  0x75   : > { %950 = vmatpush1.bf16.msra.mxu0 %v2964_v8  ;;  %2858 = vmatpush1.bf16.msra.mxu1 %v2964_v8  ;;  %v3063_v8 = vld [vmem:[%s3466_s13 + $0x1d0] ss:$8 sps:$4 sm:$0xff]  }
  0x76   : > { %951 = vmatprep.subr.bf16.mxu0 %v3282_v0  ;;  %2843 = vmatprep.subr.bf16.mxu1 %v3282_v0 }
  0x79   : > { %952 = vmatpush1.bf16.msra.mxu0 %v2965_v9  ;;  %2859 = vmatpush1.bf16.msra.mxu1 %v2965_v9  ;;  %v3037_v9 = vld [vmem:[%s3466_s13 + $0xe4] ss:$8 sps:$4 sm:$0xff]  }
  0x7a   : > { %953 = vmatprep.subr.bf16.mxu0 %v3282_v0  ;;  %2844 = vmatprep.subr.bf16.mxu1 %v3282_v0 }
  0x7d   : > { %954 = vmatpush1.bf16.msra.mxu0 %v2966_v11  ;;  %2860 = vmatpush1.bf16.msra.mxu1 %v2966_v11  ;;  %v3039_v11 = vld [vmem:[%s3466_s13 + $0xe0] ss:$8 sps:$4 sm:$0xff]  }
  0x7e   : > { %955 = vmatprep.subr.bf16.mxu0 %v3282_v0  ;;  %2845 = vmatprep.subr.bf16.mxu1 %v3282_v0 }
  0x81   : > { %956 = vmatpush1.bf16.msra.mxu0 %v2967_v12  ;;  %2861 = vmatpush1.bf16.msra.mxu1 %v2967_v12  ;;  %v3066_v12 = vld [vmem:[%s3466_s13 + $0x1e0] ss:$8 sps:$4 sm:$0xff]  }
  0x82   : > { %957 = vmatprep.subr.bf16.mxu0 %v3282_v0  ;;  %2846 = vmatprep.subr.bf16.mxu1 %v3282_v0 }
  0x85   : > { %958 = vmatpush1.bf16.msra.mxu0 %v2968_v13  ;;  %2862 = vmatpush1.bf16.msra.mxu1 %v2968_v13  ;;  %v3043_v13 = vld [vmem:[%s3466_s13 + $0xf4] ss:$8 sps:$4 sm:$0xff]  }
  0x86   : > { %959 = vmatprep.subr.bf16.mxu0 %v3282_v0  ;;  %2847 = vmatprep.subr.bf16.mxu1 %v3282_v0 }
  0x89   : > { %960 = vmatpush1.bf16.msra.mxu0 %v2969_v14  ;;  %2863 = vmatpush1.bf16.msra.mxu1 %v2969_v14  ;;  %v3067_v14 = vld [vmem:[%s3466_s13 + $0x1f4] ss:$8 sps:$4 sm:$0xff]  }
  0x8a   : > { %961 = vmatprep.subr.bf16.mxu0 %v3282_v0  ;;  %2848 = vmatprep.subr.bf16.mxu1 %v3282_v0 }
  0x8d   : > { %962 = vmatpush1.bf16.msra.mxu0 %v2970_v15  ;;  %2864 = vmatpush1.bf16.msra.mxu1 %v2970_v15  ;;  %v3045_v15 = vld [vmem:[%s3466_s13 + $0xf0] ss:$8 sps:$4 sm:$0xff]  }
  0x8e   : > { %963 = vmatprep.subr.bf16.mxu0 %v3282_v0  ;;  %2849 = vmatprep.subr.bf16.mxu1 %v3282_v0 }
  0x91   : > { %964 = vmatpush1.bf16.msra.mxu0 %v2971_v16  ;;  %2865 = vmatpush1.bf16.msra.mxu1 %v2971_v16  ;;  %v3069_v16 = vld [vmem:[%s3466_s13 + $0x1f0] ss:$8 sps:$4 sm:$0xff]  }
  0x92   : > { %965 = vmatprep.subr.bf16.mxu0 %v3282_v0  ;;  %2850 = vmatprep.subr.bf16.mxu1 %v3282_v0 }
  0x95   : > { %966 = vmatpush1.bf16.msra.mxu0 %v2972_v17  ;;  %2866 = vmatpush1.bf16.msra.mxu1 %v2972_v17  ;;  %v1741_v17 = vlaneseq }
  0x96   : > { %967 = vmatprep.subr.bf16.mxu0 %v3282_v0  ;;  %2851 = vmatprep.subr.bf16.mxu1 %v3282_v0  ;;  %v3057_v0 = vld [vmem:[%s3466_s13 + $0x1b0] ss:$8 sps:$4 sm:$0xff]   ;;  %s3134_s13 = scalar_lea.vmem %s3133_s27, 8192 }
  0x97   : > { %p3136_p0 = scmp.lt.s32.totalorder %s3134_s13, %s3128_s5 }
  0x99   : > { %968 = vmatpush1.bf16.msra.mxu0 %v2973_v18  ;;  %2867 = vmatpush1.bf16.msra.mxu1 %v2973_v18  ;;  %v3572_v18 = vshrl.u32 %v1741_v17, 7  ;;  %p3137_p5 = por %p3136_p0, %p3135_p10 }
  0x9b   : > { %p3138_p9 = pnand %p3137_p5, %p3131_p12 }
  0x9c   : > { %970 = vmatmul.mubr.bf16.vlgmr.msra.gmra.mrb[0].mxu0 %v2974_v19  ;;  %1098 = vmatmul.mubr.bf16.vlgmr.msra.gmra.mrb[0].mxu1 %v2998_v20  ;;  %v3575_v19 = vstv %s2570_s23  ;;  %v1743_v20 = vadd.s32 8, %v3572_v18 }
  0x9d   : > { %977 = vmatprep.mubr.bf16.mxu0 %v2977_v21  ;;  %1105 = vmatprep.mubr.bf16.mxu1 %v3004_v22  ;;  %v1808_v21 = vadd.s32 %v3575_v19, %v3572_v18 }
  0x9e   : > { %v1809_v22 = vadd.s32 %v3575_v19, %v1743_v20 }
  0x9f   : > { %vm1872_vm0 = vcmp.lt.s32.totalorder %v1808_v21, 1568 }
  0xa0   : > { %vm1873_vm1 = vcmp.lt.s32.totalorder %v1809_v22, 1568 }
  0xa4   : > { %978 = vmatmul.mubr.bf16.gmra.mrb[4].mxu0 %v2979_v23  ;;  %1106 = vmatmul.mubr.bf16.gmra.mrb[4].mxu1 %v3006_v24  ;;  %v1744_v23 = vadd.s32 16, %v3572_v18 }
  0xa5   : > { %985 = vmatprep.mubr.bf16.mxu0 %v2980_v25  ;;  %1113 = vmatprep.mubr.bf16.mxu1 %v3010_v26  ;;  %v1745_v25 = vadd.s32 24, %v3572_v18 }
  0xac   : > { %986 = vmatmul.mubr.bf16.gmra.mrb[8].mxu0 %v2982_v27  ;;  %1114 = vmatmul.mubr.bf16.gmra.mrb[8].mxu1 %v3012_v28 }
  0xad   : > { %993 = vmatprep.mubr.bf16.mxu0 %v2983_v29  ;;  %1121 = vmatprep.mubr.bf16.mxu1 %v3016_v30 }
  0xb4   : > { %994 = vmatmul.mubr.bf16.gmra.mrb[12].mxu0 %v2985_v31  ;;  %1122 = vmatmul.mubr.bf16.gmra.mrb[12].mxu1 %v3018_v32  ;;  %v1810_v31 = vadd.s32 %v3575_v19, %v1744_v23 }
  0xb5   : > { %1001 = vmatprep.mubr.bf16.mxu0 %v2986_v33  ;;  %1129 = vmatprep.mubr.bf16.mxu1 %v3022_v34 }
  0xb6   : > { %vm1874_vm2 = vcmp.lt.s32.totalorder %v1810_v31, 1568 }
  0xbc   : > { %1002 = vmatmul.mubr.bf16.gmra.mrb[16].mxu0 %v2988_v35  ;;  %1130 = vmatmul.mubr.bf16.gmra.mrb[16].mxu1 %v3024_v36 }
  0xbd   : > { %1009 = vmatprep.mubr.bf16.mxu0 %v2989_v37  ;;  %1137 = vmatprep.mubr.bf16.mxu1 %v3028_v38 }
  0xc4   : > { %1010 = vmatmul.mubr.bf16.gmra.mrb[20].mxu0 %v2991_v39  ;;  %1138 = vmatmul.mubr.bf16.gmra.mrb[20].mxu1 %v3030_v40 }
  0xc5   : > { %1017 = vmatprep.mubr.bf16.mxu0 %v2992_v41  ;;  %1145 = vmatprep.mubr.bf16.mxu1 %v3034_v42  ;;  %v1811_v41 = vadd.s32 %v3575_v19, %v1745_v25  ;;  %v1750_v25 = vadd.s32 64, %v3572_v18 }
  0xc7   : > { %vm1875_vm3 = vcmp.lt.s32.totalorder %v1811_v41, 1568 }
  0xcc   : > { %1018 = vmatmul.mubr.bf16.gmra.mrb[24].mxu0 %v2994_v43  ;;  %1146 = vmatmul.mubr.bf16.gmra.mrb[24].mxu1 %v3036_v44  ;;  %v1746_v43 = vadd.s32 32, %v3572_v18 }
  0xcd   : > { %1025 = vmatprep.mubr.bf16.mxu0 %v2995_v45  ;;  %1153 = vmatprep.mubr.bf16.mxu1 %v3040_v46  ;;  %v1747_v45 = vadd.s32 40, %v3572_v18 }
  0xd4   : > { %1026 = vmatmul.mubr.bf16.gmra.mrb[28].mxu0 %v2997_v47  ;;  %1154 = vmatmul.mubr.bf16.gmra.mrb[28].mxu1 %v3042_v48 }
  0xd5   : > { %1033 = vmatprep.mubr.bf16.mxu0 %v3001_v49  ;;  %1161 = vmatprep.mubr.bf16.mxu1 %v3046_v50 }
  0xdc   : > { %1034 = vmatmul.mubr.bf16.gmra.mrb[32].mxu0 %v3003_v51  ;;  %1162 = vmatmul.mubr.bf16.gmra.mrb[32].mxu1 %v3048_v52 }
  0xdd   : > { %1041 = vmatprep.mubr.bf16.mxu0 %v3007_v53  ;;  %1169 = vmatprep.mubr.bf16.mxu1 %v3049_v54  ;;  %v1812_v53 = vadd.s32 %v3575_v19, %v1746_v43 }
  0xdf   : > { %vm1876_vm4 = vcmp.lt.s32.totalorder %v1812_v53, 1568 }
  0xe4   : > { %1042 = vmatmul.mubr.bf16.gmra.mrb[36].mxu0 %v3009_v55  ;;  %1170 = vmatmul.mubr.bf16.gmra.mrb[36].mxu1 %v3051_v56 }
  0xe5   : > { %1049 = vmatprep.mubr.bf16.mxu0 %v3013_v57  ;;  %1177 = vmatprep.mubr.bf16.mxu1 %v3052_v58 }
  0xec   : > { %1050 = vmatmul.mubr.bf16.gmra.mrb[40].mxu0 %v3015_v59  ;;  %1178 = vmatmul.mubr.bf16.gmra.mrb[40].mxu1 %v3054_v60 }
  0xed   : > { %1057 = vmatprep.mubr.bf16.mxu0 %v3019_v61  ;;  %1185 = vmatprep.mubr.bf16.mxu1 %v3055_v62 }
  0xf4   : > { %1058 = vmatmul.mubr.bf16.gmra.mrb[44].mxu0 %v3021_v63  ;;  %1186 = vmatmul.mubr.bf16.gmra.mrb[44].mxu1 %v3057_v0  ;;  %v1813_v63 = vadd.s32 %v3575_v19, %v1747_v45 }
  0xf5   : > { %1065 = vmatprep.mubr.bf16.mxu0 %v3025_v1  ;;  %1193 = vmatprep.mubr.bf16.mxu1 %v3058_v2  ;;  %v1748_v1 = vadd.s32 48, %v3572_v18 }
  0xf6   : > { %vm1877_vm5 = vcmp.lt.s32.totalorder %v1813_v63, 1568 }
  0xfc   : > { %1066 = vmatmul.mubr.bf16.gmra.mrb[48].mxu0 %v3027_v3  ;;  %1194 = vmatmul.mubr.bf16.gmra.mrb[48].mxu1 %v3060_v4  ;;  %v1749_v3 = vadd.s32 56, %v3572_v18 }
  0xfd   : > { %1073 = vmatprep.mubr.bf16.mxu0 %v3031_v5  ;;  %1201 = vmatprep.mubr.bf16.mxu1 %v3061_v6 }
  0xfe   : > { %v1815_v23 = vadd.s32 %v3575_v19, %v1749_v3 }
 0x100   : > { %vm1879_vm7 = vcmp.lt.s32.totalorder %v1815_v23, 1568 }
 0x104   : > { %1074 = vmatmul.mubr.bf16.gmra.mrb[52].mxu0 %v3033_v7  ;;  %1202 = vmatmul.mubr.bf16.gmra.mrb[52].mxu1 %v3063_v8 }
 0x105   : > { %1081 = vmatprep.mubr.bf16.mxu0 %v3037_v9  ;;  %1209 = vmatprep.mubr.bf16.mxu1 %v3064_v10 }
 0x10c   : > { %1082 = vmatmul.mubr.bf16.gmra.mrb[56].mxu0 %v3039_v11  ;;  %1210 = vmatmul.mubr.bf16.gmra.mrb[56].mxu1 %v3066_v12  ;;  %v1814_v11 = vadd.s32 %v3575_v19, %v1748_v1 }
 0x10d   : > { %1089 = vmatprep.mubr.bf16.mxu0 %v3043_v13  ;;  %1217 = vmatprep.mubr.bf16.mxu1 %v3067_v14 }
 0x10e   : > { %vm1878_vm6 = vcmp.lt.s32.totalorder %v1814_v11, 1568 }
 0x114   : > { %1090 = vmatmul.mubr.bf16.gmra.mrb[60].mxu0 %v3045_v15  ;;  %1218 = vmatmul.mubr.bf16.gmra.mrb[60].mxu1 %v3069_v16 }
 0x16f   : > { %v971_v24 = vpop.f32.mrb[0].mxu0  ;;  %v3584_v26 = vpop.f32.mrb[0].mxu1 }
 0x170   : > { %v1936_v27 = vsel %vm1872_vm0, %v971_v24, 0.0  ;;  %v973_v28 = vpop.f32.mrb[1].mxu0  ;;  %v1101_v29 = vpop.f32.mrb[1].mxu1 }
 0x171   : > { %v974_v30 = vpop.f32.mrb[2].mxu0  ;;  %v3587_v32 = vpop.f32.mrb[2].mxu1  ;;  %v2070_v38 = vmul.f32 %v1936_v27, %v1936_v27  ;;  %v1751_v28 = vadd.s32 72, %v3572_v18 }
 0x172   : > { %v2648_v33 = vpack.c.bf16 %v974_v30, %v971_v24  ;;  %v1937_v34 = vsel %vm1873_vm1, %v974_v30, 0.0  ;;  %v976_v35 = vpop.f32.mrb[3].mxu0  ;;  %v2728_v36 = vpack.c.bf16 %v3587_v32, %v3584_v26  ;;  %v1104_v37 = vpop.f32.mrb[3].mxu1 }
 0x173   : > { %v2000_v39 = vadd.f32 %v1937_v34, %v1936_v27  ;;  %v2071_v40 = vmul.f32 %v1937_v34, %v1937_v34  ;;  %v1816_v37 = vadd.s32 %v3575_v19, %v1750_v25 }
 0x174   : > { %2649 = vst [vmem:[%s3592_s12] sm:$0xff] %v2648_v33   ;;  %2820 = vst [vmem:[%s3592_s12 + $0x80] sm:$0xff] %v2728_v36  }
 0x175   : > { %v2134_v42 = vadd.f32 %v2071_v40, %v2070_v38  ;;  %vm1880_vm8 = vcmp.lt.s32.totalorder %v1816_v37, 1568 }
 0x177   : > { %v979_v44 = vpop.f32.mrb[4].mxu0  ;;  %v3598_v46 = vpop.f32.mrb[4].mxu1 }
 0x178   : > { %v1938_v47 = vsel %vm1874_vm2, %v979_v44, 0.0  ;;  %v981_v48 = vpop.f32.mrb[5].mxu0  ;;  %v1109_v49 = vpop.f32.mrb[5].mxu1 }
 0x179   : > { %v2001_v50 = vadd.f32 %v2000_v39, %v1938_v47  ;;  %v2072_v51 = vmul.f32 %v1938_v47, %v1938_v47  ;;  %v982_v52 = vpop.f32.mrb[6].mxu0  ;;  %v3601_v54 = vpop.f32.mrb[6].mxu1  ;;  %v1817_v48 = vadd.s32 %v3575_v19, %v1751_v28 }
 0x17a   : > { %v2653_v55 = vpack.c.bf16 %v982_v52, %v979_v44  ;;  %v1939_v56 = vsel %vm1875_vm3, %v982_v52, 0.0  ;;  %v984_v57 = vpop.f32.mrb[7].mxu0  ;;  %v2733_v58 = vpack.c.bf16 %v3601_v54, %v3598_v46  ;;  %v1112_v59 = vpop.f32.mrb[7].mxu1  ;;  %v1753_v52 = vadd.s32 88, %v3572_v18 }
 0x17b   : > { %v2135_v60 = vadd.f32 %v2134_v42, %v2072_v51  ;;  %v2002_v61 = vadd.f32 %v2001_v50, %v1939_v56  ;;  %v2073_v62 = vmul.f32 %v1939_v56, %v1939_v56  ;;  %v1752_v50 = vadd.s32 80, %v3572_v18 }
 0x17c   : > { %2805 = vst [vmem:[%s3592_s12 + $0x8] sm:$0xff] %v2653_v55   ;;  %2821 = vst [vmem:[%s3592_s12 + $0x88] sm:$0xff] %v2733_v58   ;;  %vm1881_vm9 = vcmp.lt.s32.totalorder %v1817_v48, 1568 }
 0x17d   : > { %v2136_v0 = vadd.f32 %v2135_v60, %v2073_v62 }
 0x17f   : > { %v987_v2 = vpop.f32.mrb[8].mxu0  ;;  %v3610_v4 = vpop.f32.mrb[8].mxu1 }
 0x180   : > { %v1940_v5 = vsel %vm1876_vm4, %v987_v2, 0.0  ;;  %v989_v6 = vpop.f32.mrb[9].mxu0  ;;  %v1117_v7 = vpop.f32.mrb[9].mxu1 }
 0x181   : > { %v2003_v8 = vadd.f32 %v2002_v61, %v1940_v5  ;;  %v2074_v9 = vmul.f32 %v1940_v5, %v1940_v5  ;;  %v990_v10 = vpop.f32.mrb[10].mxu0  ;;  %v3613_v12 = vpop.f32.mrb[10].mxu1  ;;  %v1818_v61 = vadd.s32 %v3575_v19, %v1752_v50 }
 0x182   : > { %v2658_v13 = vpack.c.bf16 %v990_v10, %v987_v2  ;;  %v1941_v14 = vsel %vm1877_vm5, %v990_v10, 0.0  ;;  %v992_v15 = vpop.f32.mrb[11].mxu0  ;;  %v2738_v16 = vpack.c.bf16 %v3613_v12, %v3610_v4  ;;  %v1120_v17 = vpop.f32.mrb[11].mxu1  ;;  %v1754_v10 = vadd.s32 96, %v3572_v18 }
 0x183   : > { %v2137_v20 = vadd.f32 %v2136_v0, %v2074_v9  ;;  %v2004_v21 = vadd.f32 %v2003_v8, %v1941_v14  ;;  %v2075_v22 = vmul.f32 %v1941_v14, %v1941_v14  ;;  %v1819_v8 = vadd.s32 %v3575_v19, %v1753_v52 }
 0x184   : > { %2806 = vst [vmem:[%s3592_s12 + $0x10] sm:$0xff] %v2658_v13   ;;  %2822 = vst [vmem:[%s3592_s12 + $0x90] sm:$0xff] %v2738_v16   ;;  %vm1882_vm10 = vcmp.lt.s32.totalorder %v1818_v61, 1568  ;;  %v1755_v13 = vadd.s32 104, %v3572_v18  ;;  %v1820_v23 = vadd.s32 %v3575_v19, %v1754_v10 }
 0x185   : > { %v2138_v24 = vadd.f32 %v2137_v20, %v2075_v22  ;;  %vm1883_vm11 = vcmp.lt.s32.totalorder %v1819_v8, 1568 }
 0x186   : > { %vm1884_vm12 = vcmp.lt.s32.totalorder %v1820_v23, 1568 }
 0x187   : > { %v995_v27 = vpop.f32.mrb[12].mxu0  ;;  %v3622_v29 = vpop.f32.mrb[12].mxu1 }
 0x188   : > { %v1942_v30 = vsel %vm1878_vm6, %v995_v27, 0.0  ;;  %v997_v31 = vpop.f32.mrb[13].mxu0  ;;  %v1125_v33 = vpop.f32.mrb[13].mxu1 }
 0x189   : > { %v2005_v34 = vadd.f32 %v2004_v21, %v1942_v30  ;;  %v2076_v35 = vmul.f32 %v1942_v30, %v1942_v30  ;;  %v998_v36 = vpop.f32.mrb[14].mxu0  ;;  %v3625_v38 = vpop.f32.mrb[14].mxu1 }
 0x18a   : > { %v2663_v39 = vpack.c.bf16 %v998_v36, %v995_v27  ;;  %v1943_v40 = vsel %vm1879_vm7, %v998_v36, 0.0  ;;  %v1000_v41 = vpop.f32.mrb[15].mxu0  ;;  %v2743_v42 = vpack.c.bf16 %v3625_v38, %v3622_v29  ;;  %v1128_v43 = vpop.f32.mrb[15].mxu1  ;;  %v1821_v36 = vadd.s32 %v3575_v19, %v1755_v13 }
 0x18b   : > { %v2139_v44 = vadd.f32 %v2138_v24, %v2076_v35  ;;  %v2006_v45 = vadd.f32 %v2005_v34, %v1943_v40  ;;  %v2077_v47 = vmul.f32 %v1943_v40, %v1943_v40  ;;  %v1757_v41 = vadd.s32 120, %v3572_v18 }
 0x18c   : > { %2807 = vst [vmem:[%s3592_s12 + $0x18] sm:$0xff] %v2663_v39   ;;  %2823 = vst [vmem:[%s3592_s12 + $0x98] sm:$0xff] %v2743_v42   ;;  %v1756_v39 = vadd.s32 112, %v3572_v18  ;;  %vm1885_vm13 = vcmp.lt.s32.totalorder %v1821_v36, 1568 }
 0x18d   : > { %v2140_v49 = vadd.f32 %v2139_v44, %v2077_v47 }
 0x18e   : > { %v1822_v50 = vadd.s32 %v3575_v19, %v1756_v39 }
 0x18f   : > { %v1003_v51 = vpop.f32.mrb[16].mxu0  ;;  %v3634_v53 = vpop.f32.mrb[16].mxu1 }
 0x190   : > { %v1944_v55 = vsel %vm1880_vm8, %v1003_v51, 0.0  ;;  %v1005_v56 = vpop.f32.mrb[17].mxu0  ;;  %v1133_v57 = vpop.f32.mrb[17].mxu1  ;;  %vm1886_vm14 = vcmp.lt.s32.totalorder %v1822_v50, 1568 }
 0x191   : > { %v2007_v58 = vadd.f32 %v2006_v45, %v1944_v55  ;;  %v2078_v59 = vmul.f32 %v1944_v55, %v1944_v55  ;;  %v1006_v60 = vpop.f32.mrb[18].mxu0  ;;  %v3637_v62 = vpop.f32.mrb[18].mxu1 }
 0x192   : > { %v2668_v63 = vpack.c.bf16 %v1006_v60, %v1003_v51  ;;  %v1945_v0 = vsel %vm1881_vm9, %v1006_v60, 0.0  ;;  %v1008_v1 = vpop.f32.mrb[19].mxu0  ;;  %v2748_v2 = vpack.c.bf16 %v3637_v62, %v3634_v53  ;;  %v1136_v3 = vpop.f32.mrb[19].mxu1 }
 0x193   : > { %v2141_v5 = vadd.f32 %v2140_v49, %v2078_v59  ;;  %v2008_v6 = vadd.f32 %v2007_v58, %v1945_v0  ;;  %v2079_v7 = vmul.f32 %v1945_v0, %v1945_v0  ;;  %v1758_v1 = vadd.s32 128, %v3572_v18 }
 0x194   : > { %2808 = vst [vmem:[%s3592_s12 + $0x20] sm:$0xff] %v2668_v63   ;;  %2824 = vst [vmem:[%s3592_s12 + $0xa0] sm:$0xff] %v2748_v2   ;;  %v1823_v63 = vadd.s32 %v3575_v19, %v1757_v41  ;;  %v1759_v3 = vadd.s32 136, %v3572_v18 }
 0x195   : > { %v2142_v9 = vadd.f32 %v2141_v5, %v2079_v7  ;;  %v1824_v13 = vadd.s32 %v3575_v19, %v1758_v1 }
 0x196   : > { %vm1887_vm15 = vcmp.lt.s32.totalorder %v1823_v63, 1568  ;;  %v1763_v63 = vadd.s32 168, %v3572_v18 }
 0x197   : > { %v1011_v11 = vpop.f32.mrb[20].mxu0  ;;  %v3646_v14 = vpop.f32.mrb[20].mxu1  ;;  %vm1888_vm0 = vcmp.lt.s32.totalorder %v1824_v13, 1568 }
 0x198   : > { %v1946_v15 = vsel %vm1882_vm10, %v1011_v11, 0.0  ;;  %v1013_v16 = vpop.f32.mrb[21].mxu0  ;;  %v1141_v17 = vpop.f32.mrb[21].mxu1 }
 0x199   : > { %v2009_v20 = vadd.f32 %v2008_v6, %v1946_v15  ;;  %v2080_v21 = vmul.f32 %v1946_v15, %v1946_v15  ;;  %v1014_v22 = vpop.f32.mrb[22].mxu0  ;;  %v3649_v24 = vpop.f32.mrb[22].mxu1 }
 0x19a   : > { %v2673_v25 = vpack.c.bf16 %v1014_v22, %v1011_v11  ;;  %v1947_v27 = vsel %vm1883_vm11, %v1014_v22, 0.0  ;;  %v1016_v28 = vpop.f32.mrb[23].mxu0  ;;  %v2753_v30 = vpack.c.bf16 %v3649_v24, %v3646_v14  ;;  %v1144_v31 = vpop.f32.mrb[23].mxu1 }
 0x19b   : > { %v2143_v33 = vadd.f32 %v2142_v9, %v2080_v21  ;;  %v2010_v34 = vadd.f32 %v2009_v20, %v1947_v27  ;;  %v2081_v35 = vmul.f32 %v1947_v27, %v1947_v27  ;;  %v1825_v28 = vadd.s32 %v3575_v19, %v1759_v3 }
 0x19c   : > { %2809 = vst [vmem:[%s3592_s12 + $0x28] sm:$0xff] %v2673_v25   ;;  %2825 = vst [vmem:[%s3592_s12 + $0xa8] sm:$0xff] %v2753_v30   ;;  %v1760_v31 = vadd.s32 144, %v3572_v18 }
 0x19d   : > { %v2144_v37 = vadd.f32 %v2143_v33, %v2081_v35  ;;  %vm1889_vm1 = vcmp.lt.s32.totalorder %v1825_v28, 1568  ;;  %v1764_v28 = vadd.s32 176, %v3572_v18 }
 0x19f   : > { %v1019_v40 = vpop.f32.mrb[24].mxu0  ;;  %v3658_v42 = vpop.f32.mrb[24].mxu1 }
 0x1a0   : > { %v1948_v43 = vsel %vm1884_vm12, %v1019_v40, 0.0  ;;  %v1021_v44 = vpop.f32.mrb[25].mxu0  ;;  %v1149_v45 = vpop.f32.mrb[25].mxu1 }
 0x1a1   : > { %v2011_v47 = vadd.f32 %v2010_v34, %v1948_v43  ;;  %v2082_v48 = vmul.f32 %v1948_v43, %v1948_v43  ;;  %v1022_v49 = vpop.f32.mrb[26].mxu0  ;;  %v3661_v51 = vpop.f32.mrb[26].mxu1  ;;  %v1761_v34 = vadd.s32 152, %v3572_v18  ;;  %v1826_v44 = vadd.s32 %v3575_v19, %v1760_v31 }
 0x1a2   : > { %v2678_v52 = vpack.c.bf16 %v1022_v49, %v1019_v40  ;;  %v1949_v55 = vsel %vm1885_vm13, %v1022_v49, 0.0  ;;  %v1024_v56 = vpop.f32.mrb[27].mxu0  ;;  %v2758_v57 = vpack.c.bf16 %v3661_v51, %v3658_v42  ;;  %v1152_v58 = vpop.f32.mrb[27].mxu1  ;;  %v1765_v31 = vadd.s32 184, %v3572_v18 }
 0x1a3   : > { %v2145_v59 = vadd.f32 %v2144_v37, %v2082_v48  ;;  %v2012_v60 = vadd.f32 %v2011_v47, %v1949_v55  ;;  %v2083_v61 = vmul.f32 %v1949_v55, %v1949_v55  ;;  %v1827_v58 = vadd.s32 %v3575_v19, %v1761_v34 }
 0x1a4   : > { %2810 = vst [vmem:[%s3592_s12 + $0x30] sm:$0xff] %v2678_v52   ;;  %2826 = vst [vmem:[%s3592_s12 + $0xb0] sm:$0xff] %v2758_v57   ;;  %vm1890_vm2 = vcmp.lt.s32.totalorder %v1826_v44, 1568 }
 0x1a5   : > { %v2146_v0 = vadd.f32 %v2145_v59, %v2083_v61  ;;  %vm1891_vm3 = vcmp.lt.s32.totalorder %v1827_v58, 1568  ;;  %v1831_v58 = vadd.s32 %v3575_v19, %v1765_v31  ;;  %v1768_v31 = vadd.s32 208, %v3572_v18 }
 0x1a7   : > { %v1027_v2 = vpop.f32.mrb[28].mxu0  ;;  %v3670_v5 = vpop.f32.mrb[28].mxu1  ;;  %vm1895_vm7 = vcmp.lt.s32.totalorder %v1831_v58, 1568 }
 0x1a8   : > { %v1950_v6 = vsel %vm1886_vm14, %v1027_v2, 0.0  ;;  %v1029_v7 = vpop.f32.mrb[29].mxu0  ;;  %v1157_v8 = vpop.f32.mrb[29].mxu1 }
 0x1a9   : > { %v2013_v9 = vadd.f32 %v2012_v60, %v1950_v6  ;;  %v2084_v10 = vmul.f32 %v1950_v6, %v1950_v6  ;;  %v1030_v11 = vpop.f32.mrb[30].mxu0  ;;  %v3673_v15 = vpop.f32.mrb[30].mxu1  ;;  %v1762_v60 = vadd.s32 160, %v3572_v18 }
 0x1aa   : > { %v2683_v16 = vpack.c.bf16 %v1030_v11, %v1027_v2  ;;  %v1951_v17 = vsel %vm1887_vm15, %v1030_v11, 0.0  ;;  %v1032_v20 = vpop.f32.mrb[31].mxu0  ;;  %v2763_v21 = vpack.c.bf16 %v3673_v15, %v3670_v5  ;;  %v1160_v22 = vpop.f32.mrb[31].mxu1 }
 0x1ab   : > { %v2147_v23 = vadd.f32 %v2146_v0, %v2084_v10  ;;  %v2014_v25 = vadd.f32 %v2013_v9, %v1951_v17  ;;  %v2085_v27 = vmul.f32 %v1951_v17, %v1951_v17  ;;  %v1828_v9 = vadd.s32 %v3575_v19, %v1762_v60 }
 0x1ac   : > { %2811 = vst [vmem:[%s3592_s12 + $0x38] sm:$0xff] %v2683_v16   ;;  %2827 = vst [vmem:[%s3592_s12 + $0xb8] sm:$0xff] %v2763_v21   ;;  %v1766_v60 = vadd.s32 192, %v3572_v18 }
 0x1ad   : > { %v2148_v30 = vadd.f32 %v2147_v23, %v2085_v27  ;;  %vm1892_vm4 = vcmp.lt.s32.totalorder %v1828_v9, 1568 }
 0x1af   : > { %v1035_v33 = vpop.f32.mrb[32].mxu0  ;;  %v3682_v35 = vpop.f32.mrb[32].mxu1 }
 0x1b0   : > { %v1952_v36 = vsel %vm1888_vm0, %v1035_v33, 0.0  ;;  %v1037_v37 = vpop.f32.mrb[33].mxu0  ;;  %v1165_v39 = vpop.f32.mrb[33].mxu1 }
 0x1b1   : > { %v2015_v40 = vadd.f32 %v2014_v25, %v1952_v36  ;;  %v2086_v41 = vmul.f32 %v1952_v36, %v1952_v36  ;;  %v1038_v43 = vpop.f32.mrb[34].mxu0  ;;  %v3685_v45 = vpop.f32.mrb[34].mxu1  ;;  %v1829_v25 = vadd.s32 %v3575_v19, %v1763_v63  ;;  %v1767_v63 = vadd.s32 200, %v3572_v18 }
 0x1b2   : > { %v2688_v47 = vpack.c.bf16 %v1038_v43, %v1035_v33  ;;  %v1953_v48 = vsel %vm1889_vm1, %v1038_v43, 0.0  ;;  %v1040_v49 = vpop.f32.mrb[35].mxu0  ;;  %v2768_v50 = vpack.c.bf16 %v3685_v45, %v3682_v35  ;;  %v1168_v52 = vpop.f32.mrb[35].mxu1  ;;  %v1830_v43 = vadd.s32 %v3575_v19, %v1764_v28 }
 0x1b3   : > { %v2149_v55 = vadd.f32 %v2148_v30, %v2086_v41  ;;  %v2016_v56 = vadd.f32 %v2015_v40, %v1953_v48  ;;  %v2087_v57 = vmul.f32 %v1953_v48, %v1953_v48  ;;  %vm1893_vm5 = vcmp.lt.s32.totalorder %v1829_v25, 1568 }
 0x1b4   : > { %2812 = vst [vmem:[%s3592_s12 + $0x40] sm:$0xff] %v2688_v47   ;;  %2828 = vst [vmem:[%s3592_s12 + $0xc0] sm:$0xff] %v2768_v50   ;;  %vm1894_vm6 = vcmp.lt.s32.totalorder %v1830_v43, 1568  ;;  %v1833_v28 = vadd.s32 %v3575_v19, %v1767_v63 }
 0x1b5   : > { %v2150_v59 = vadd.f32 %v2149_v55, %v2087_v57 }
 0x1b6   : > { %vm1897_vm9 = vcmp.lt.s32.totalorder %v1833_v28, 1568 }
 0x1b7   : > { %v1043_v61 = vpop.f32.mrb[36].mxu0  ;;  %v3694_v0 = vpop.f32.mrb[36].mxu1 }
 0x1b8   : > { %v1954_v1 = vsel %vm1890_vm2, %v1043_v61, 0.0  ;;  %v1045_v2 = vpop.f32.mrb[37].mxu0  ;;  %v1173_v3 = vpop.f32.mrb[37].mxu1 }
 0x1b9   : > { %v2017_v6 = vadd.f32 %v2016_v56, %v1954_v1  ;;  %v2088_v7 = vmul.f32 %v1954_v1, %v1954_v1  ;;  %v1046_v8 = vpop.f32.mrb[38].mxu0  ;;  %v3697_v10 = vpop.f32.mrb[38].mxu1 }
 0x1ba   : > { %v2693_v11 = vpack.c.bf16 %v1046_v8, %v1043_v61  ;;  %v1955_v13 = vsel %vm1891_vm3, %v1046_v8, 0.0  ;;  %v1048_v16 = vpop.f32.mrb[39].mxu0  ;;  %v2773_v17 = vpack.c.bf16 %v3697_v10, %v3694_v0  ;;  %v1176_v20 = vpop.f32.mrb[39].mxu1 }
 0x1bb   : > { %v2151_v21 = vadd.f32 %v2150_v59, %v2088_v7  ;;  %v2018_v22 = vadd.f32 %v2017_v6, %v1955_v13  ;;  %v2089_v23 = vmul.f32 %v1955_v13, %v1955_v13 }
 0x1bc   : > { %2813 = vst [vmem:[%s3592_s12 + $0x48] sm:$0xff] %v2693_v11   ;;  %2829 = vst [vmem:[%s3592_s12 + $0xc8] sm:$0xff] %v2773_v17   ;;  %v1832_v11 = vadd.s32 %v3575_v19, %v1766_v60 }
 0x1bd   : > { %v2152_v27 = vadd.f32 %v2151_v21, %v2089_v23 }
 0x1be   : > { %vm1896_vm8 = vcmp.lt.s32.totalorder %v1832_v11, 1568 }
 0x1bf   : > { %v1051_v30 = vpop.f32.mrb[40].mxu0  ;;  %v3706_v33 = vpop.f32.mrb[40].mxu1 }
 0x1c0   : > { %v1956_v34 = vsel %vm1892_vm4, %v1051_v30, 0.0  ;;  %v1053_v36 = vpop.f32.mrb[41].mxu0  ;;  %v1181_v37 = vpop.f32.mrb[41].mxu1 }
 0x1c1   : > { %v2019_v39 = vadd.f32 %v2018_v22, %v1956_v34  ;;  %v2090_v40 = vmul.f32 %v1956_v34, %v1956_v34  ;;  %v1054_v41 = vpop.f32.mrb[42].mxu0  ;;  %v3709_v44 = vpop.f32.mrb[42].mxu1  ;;  %v1769_v36 = vadd.s32 216, %v3572_v18 }
 0x1c2   : > { %v2698_v47 = vpack.c.bf16 %v1054_v41, %v1051_v30  ;;  %v1957_v48 = vsel %vm1893_vm5, %v1054_v41, 0.0  ;;  %v1056_v49 = vpop.f32.mrb[43].mxu0  ;;  %v2778_v50 = vpack.c.bf16 %v3709_v44, %v3706_v33  ;;  %v1184_v52 = vpop.f32.mrb[43].mxu1 }
 0x1c3   : > { %v2153_v55 = vadd.f32 %v2152_v27, %v2090_v40  ;;  %v2020_v56 = vadd.f32 %v2019_v39, %v1957_v48  ;;  %v2091_v57 = vmul.f32 %v1957_v48, %v1957_v48  ;;  %v1834_v49 = vadd.s32 %v3575_v19, %v1768_v31 }
 0x1c4   : > { %2814 = vst [vmem:[%s3592_s12 + $0x50] sm:$0xff] %v2698_v47   ;;  %2830 = vst [vmem:[%s3592_s12 + $0xd0] sm:$0xff] %v2778_v50   ;;  %v1835_v63 = vadd.s32 %v3575_v19, %v1769_v36 }
 0x1c5   : > { %v2154_v59 = vadd.f32 %v2153_v55, %v2091_v57  ;;  %vm1898_vm10 = vcmp.lt.s32.totalorder %v1834_v49, 1568  ;;  %v1773_v49 = vadd.s32 248, %v3572_v18 }
 0x1c6   : > { %vm1899_vm11 = vcmp.lt.s32.totalorder %v1835_v63, 1568 }
 0x1c7   : > { %v1059_v61 = vpop.f32.mrb[44].mxu0  ;;  %v3718_v1 = vpop.f32.mrb[44].mxu1 }
 0x1c8   : > { %v1958_v2 = vsel %vm1894_vm6, %v1059_v61, 0.0  ;;  %v1061_v3 = vpop.f32.mrb[45].mxu0  ;;  %v1189_v6 = vpop.f32.mrb[45].mxu1 }
 0x1c9   : > { %v2021_v7 = vadd.f32 %v2020_v56, %v1958_v2  ;;  %v2092_v8 = vmul.f32 %v1958_v2, %v1958_v2  ;;  %v1062_v9 = vpop.f32.mrb[46].mxu0  ;;  %v3721_v13 = vpop.f32.mrb[46].mxu1  ;;  %v1770_v3 = vadd.s32 224, %v3572_v18 }
 0x1ca   : > { %v2703_v16 = vpack.c.bf16 %v1062_v9, %v1059_v61  ;;  %v1959_v17 = vsel %vm1895_vm7, %v1062_v9, 0.0  ;;  %v1064_v20 = vpop.f32.mrb[47].mxu0  ;;  %v2783_v21 = vpack.c.bf16 %v3721_v13, %v3718_v1  ;;  %v1192_v22 = vpop.f32.mrb[47].mxu1 }
 0x1cb   : > { %v2155_v23 = vadd.f32 %v2154_v59, %v2092_v8  ;;  %v2022_v25 = vadd.f32 %v2021_v7, %v1959_v17  ;;  %v2093_v27 = vmul.f32 %v1959_v17, %v1959_v17  ;;  %v1771_v7 = vadd.s32 232, %v3572_v18 }
 0x1cc   : > { %2815 = vst [vmem:[%s3592_s12 + $0x58] sm:$0xff] %v2703_v16   ;;  %2831 = vst [vmem:[%s3592_s12 + $0xd8] sm:$0xff] %v2783_v21   ;;  %v1836_v22 = vadd.s32 %v3575_v19, %v1770_v3 }
 0x1cd   : > { %v2156_v30 = vadd.f32 %v2155_v23, %v2093_v27 }
 0x1ce   : > { %vm1900_vm12 = vcmp.lt.s32.totalorder %v1836_v22, 1568 }
 0x1cf   : > { %v1067_v34 = vpop.f32.mrb[48].mxu0  ;;  %v3730_v37 = vpop.f32.mrb[48].mxu1 }
 0x1d0   : > { %v1960_v39 = vsel %vm1896_vm8, %v1067_v34, 0.0  ;;  %v1069_v40 = vpop.f32.mrb[49].mxu0  ;;  %v1197_v41 = vpop.f32.mrb[49].mxu1 }
 0x1d1   : > { %v2023_v43 = vadd.f32 %v2022_v25, %v1960_v39  ;;  %v2094_v47 = vmul.f32 %v1960_v39, %v1960_v39  ;;  %v1070_v48 = vpop.f32.mrb[50].mxu0  ;;  %v3733_v50 = vpop.f32.mrb[50].mxu1  ;;  %v1837_v40 = vadd.s32 %v3575_v19, %v1771_v7 }
 0x1d2   : > { %v2708_v52 = vpack.c.bf16 %v1070_v48, %v1067_v34  ;;  %v1961_v55 = vsel %vm1897_vm9, %v1070_v48, 0.0  ;;  %v1072_v56 = vpop.f32.mrb[51].mxu0  ;;  %v2788_v57 = vpack.c.bf16 %v3733_v50, %v3730_v37  ;;  %v1200_v58 = vpop.f32.mrb[51].mxu1 }
 0x1d3   : > { %v2157_v59 = vadd.f32 %v2156_v30, %v2094_v47  ;;  %v2024_v60 = vadd.f32 %v2023_v43, %v1961_v55  ;;  %v2095_v61 = vmul.f32 %v1961_v55, %v1961_v55  ;;  %v1772_v43 = vadd.s32 240, %v3572_v18 }
 0x1d4   : > { %2816 = vst [vmem:[%s3592_s12 + $0x60] sm:$0xff] %v2708_v52   ;;  %2832 = vst [vmem:[%s3592_s12 + $0xe0] sm:$0xff] %v2788_v57   ;;  %v1774_v47 = vadd.s32 256, %v3572_v18  ;;  %vm1901_vm13 = vcmp.lt.s32.totalorder %v1837_v40, 1568  ;;  %v1775_v55 = vadd.s32 264, %v3572_v18  ;;  %v1776_v56 = vadd.s32 272, %v3572_v18 }
 0x1d5   : > { %v2158_v2 = vadd.f32 %v2157_v59, %v2095_v61 }
 0x1d7   : > { %v1075_v6 = vpop.f32.mrb[52].mxu0  ;;  %v3742_v8 = vpop.f32.mrb[52].mxu1 }
 0x1d8   : > { %v1962_v9 = vsel %vm1898_vm10, %v1075_v6, 0.0  ;;  %v1077_v11 = vpop.f32.mrb[53].mxu0  ;;  %v1205_v16 = vpop.f32.mrb[53].mxu1 }
 0x1d9   : > { %v2025_v17 = vadd.f32 %v2024_v60, %v1962_v9  ;;  %v2096_v20 = vmul.f32 %v1962_v9, %v1962_v9  ;;  %v1078_v21 = vpop.f32.mrb[54].mxu0  ;;  %v3745_v23 = vpop.f32.mrb[54].mxu1 }
 0x1da   : > { %v2713_v25 = vpack.c.bf16 %v1078_v21, %v1075_v6  ;;  %v1963_v27 = vsel %vm1899_vm11, %v1078_v21, 0.0  ;;  %v1080_v28 = vpop.f32.mrb[55].mxu0  ;;  %v2793_v30 = vpack.c.bf16 %v3745_v23, %v3742_v8  ;;  %v1208_v31 = vpop.f32.mrb[55].mxu1  ;;  %v1840_v6 = vadd.s32 %v3575_v19, %v1774_v47 }
 0x1db   : > { %v2159_v34 = vadd.f32 %v2158_v2, %v2096_v20  ;;  %v2026_v36 = vadd.f32 %v2025_v17, %v1963_v27  ;;  %v2097_v39 = vmul.f32 %v1963_v27, %v1963_v27  ;;  %v1838_v2 = vadd.s32 %v3575_v19, %v1772_v43 }
 0x1dc   : > { %2817 = vst [vmem:[%s3592_s12 + $0x68] sm:$0xff] %v2713_v25   ;;  %2833 = vst [vmem:[%s3592_s12 + $0xe8] sm:$0xff] %v2793_v30   ;;  %v1839_v25 = vadd.s32 %v3575_v19, %v1773_v49  ;;  %v1841_v27 = vadd.s32 %v3575_v19, %v1775_v55  ;;  %v3768_v28 = vadd.s32 %v3575_v19, %v1776_v56  ;;  %v1777_v30 = vadd.s32 280, %v3572_v18 }
 0x1dd   : > { %v2160_v41 = vadd.f32 %v2159_v34, %v2097_v39  ;;  %vm1902_vm14 = vcmp.lt.s32.totalorder %v1838_v2, 1568  ;;  %vm1904_vm15 = vcmp.lt.s32.totalorder %v1840_v6, 1568  ;;  %v1778_v34 = vadd.s32 288, %v3572_v18 }
 0x1de   : > { %vm1903_vm0 = vcmp.lt.s32.totalorder %v1839_v25, 1568  ;;  %vm1905_vm1 = vcmp.lt.s32.totalorder %v1841_v27, 1568  ;;  %vm1906_vm2 = vcmp.lt.s32.totalorder %v3768_v28, 1568  ;;  %v3780_v40 = vadd.s32 %v3575_v19, %v1777_v30 }
 0x1df   : > { %v1083_v48 = vpop.f32.mrb[56].mxu0  ;;  %v3755_v52 = vpop.f32.mrb[56].mxu1  ;;  %v1780_v49 = vadd.s32 304, %v3572_v18  ;;  %v1781_v6 = vadd.s32 312, %v3572_v18 }
 0x1e0   : > { %v1964_v57 = vsel %vm1900_vm12, %v1083_v48, 0.0  ;;  %v1085_v58 = vpop.f32.mrb[57].mxu0  ;;  %v1213_v59 = vpop.f32.mrb[57].mxu1  ;;  %vm1907_vm3 = vcmp.lt.s32.totalorder %v3780_v40, 1568 }
 0x1e1   : > { %v2027_v60 = vadd.f32 %v2026_v36, %v1964_v57  ;;  %v2098_v61 = vmul.f32 %v1964_v57, %v1964_v57  ;;  %v1086_v63 = vpop.f32.mrb[58].mxu0  ;;  %v3760_v3 = vpop.f32.mrb[58].mxu1  ;;  %v1968_v59 = vsel %vm1904_vm15, %v3584_v26, 0.0  ;;  %v1969_v26 = vsel %vm1905_vm1, %v3587_v32, 0.0 }
 0x1e2   : > { %v2718_v7 = vpack.c.bf16 %v1086_v63, %v1083_v48  ;;  %v1965_v9 = vsel %vm1901_vm13, %v1086_v63, 0.0  ;;  %v1088_v11 = vpop.f32.mrb[59].mxu0  ;;  %v2798_v16 = vpack.c.bf16 %v3760_v3, %v3755_v52  ;;  %v1216_v17 = vpop.f32.mrb[59].mxu1  ;;  %v1779_v48 = vadd.s32 296, %v3572_v18 }
 0x1e3   : > { %v2161_v20 = vadd.f32 %v2160_v41, %v2098_v61  ;;  %v2028_v21 = vadd.f32 %v2027_v60, %v1965_v9  ;;  %v2099_v22 = vmul.f32 %v1965_v9, %v1965_v9  ;;  %v1844_v9 = vadd.s32 %v3575_v19, %v1778_v34 }
 0x1e4   : > { %2818 = vst [vmem:[%s3592_s12 + $0x70] sm:$0xff] %v2718_v7   ;;  %2834 = vst [vmem:[%s3592_s12 + $0xf0] sm:$0xff] %v2798_v16  }
 0x1e5   : > { %v2162_v31 = vadd.f32 %v2161_v20, %v2099_v22  ;;  %v2102_v20 = vmul.f32 %v1968_v59, %v1968_v59 }
 0x1e7   : > { %v1091_v36 = vpop.f32.mrb[60].mxu0  ;;  %v3776_v39 = vpop.f32.mrb[60].mxu1 }
 0x1e8   : > { %v1966_v41 = vsel %vm1902_vm14, %v1091_v36, 0.0  ;;  %v1093_v43 = vpop.f32.mrb[61].mxu0  ;;  %v1221_v47 = vpop.f32.mrb[61].mxu1 }
 0x1e9   : > { %v2029_v55 = vadd.f32 %v2028_v21, %v1966_v41  ;;  %v2100_v56 = vmul.f32 %v1966_v41, %v1966_v41  ;;  %v1094_v57 = vpop.f32.mrb[62].mxu0  ;;  %v3784_v58 = vpop.f32.mrb[62].mxu1  ;;  %v1845_v21 = vadd.s32 %v3575_v19, %v1779_v48 }
 0x1ea   : > { %v2723_v60 = vpack.c.bf16 %v1094_v57, %v1091_v36  ;;  %v1967_v61 = vsel %vm1903_vm0, %v1094_v57, 0.0  ;;  %v1096_v63 = vpop.f32.mrb[63].mxu0  ;;  %v2803_v2 = vpack.c.bf16 %v3784_v58, %v3776_v39  ;;  %v1224_v7 = vpop.f32.mrb[63].mxu1 }
 0x1eb   : > { %v2163_v11 = vadd.f32 %v2162_v31, %v2100_v56  ;;  %v2030_v16 = vadd.f32 %v2029_v55, %v1967_v61  ;;  %v2101_v17 = vmul.f32 %v1967_v61, %v1967_v61 }
 0x1ec   : > { %2819 = vst [vmem:[%s3592_s12 + $0x78] sm:$0xff] %v2723_v60   ;;  %2835 = vst [vmem:[%s3592_s12 + $0xf8] sm:$0xff] %v2803_v2  }
 0x1ed   : > { %v2031_v22 = vadd.f32 %v2030_v16, %v1968_v59  ;;  %v2164_v25 = vadd.f32 %v2163_v11, %v2101_v17 }
 0x1ee   : > { %3141 = shalt.err (!%p3138_p9)
}
 0x1ef   : > { %s3142_s23 = scalar_lea.hbm %s3789_s9, 4096  ;;  %s3146_s14 = scalar_lea.hbm %s4008_s2, 16384 }
 0x1f0   : > { %p3143_p1 = scmp.ne.s32.totalorder %s3789_s9, %s3142_s23  ;;  %p3147_p7 = scmp.lt.u32.totalorder %s3789_s9, %s4008_s2 }
 0x1f1   : > { %p3148_p13 = scmp.lt.u32.totalorder %s3146_s14, %s3142_s23  ;;  %p3150_p6 = scmp.lt.u32.totalorder %s3142_s23, %s3789_s9 }
 0x1f2   : > { %p3144_p2 = pnand %p3143_p1, %p3406_p11 }
 0x1f3   : > { %p3149_p4 = por %p3148_p13, %p3147_p7 }
 0x1f4   : > { %p3145_p3 = pneg %p3144_p2 }
 0x1f5   : > { %p3151_p8 = por %p3150_p6, %p3149_p4 }
 0x1f7   : > { %p3152_p12 = pnand %p3151_p8, %p3145_p3 }
 0x1f9   : > { %3155 = shalt.err (!%p3152_p12)
}
 0x1fa   : > { %s3284_s5 = smov 64   ;;  %s3285_s11 = smov 4   ;;  %v1970_v32 = vsel %vm1906_vm2, %v3598_v46, 0.0  ;;  %v1846_v27 = vadd.s32 %v3575_v19, %v1780_v49  ;;  %v1782_v30 = vadd.s32 320, %v3572_v18  ;;  %v2103_v31 = vmul.f32 %v1969_v26, %v1969_v26 }
 0x1fb   : > { %2874 = dma.vmem_to_hbm [thread:$0]  (%p3406_p11), %s3791_s26, 4096, %s3789_s9, %s2205_s28, %s3284_s5, %s3284_s5, %s3285_s11   ;;  %vm1908_vm4 = vcmp.lt.s32.totalorder %v1844_v9, 1568  ;;  %v2032_v34 = vadd.f32 %v2031_v22, %v1969_v26  ;;  %v2165_v36 = vadd.f32 %v2164_v25, %v2102_v20  ;;  %v1971_v41 = vsel %vm1907_vm3, %v3601_v54, 0.0 }
 0x1fc   : > { %v1847_v43 = vadd.s32 %v3575_v19, %v1781_v6  ;;  %v1783_v47 = vadd.s32 328, %v3572_v18  ;;  %v2104_v48 = vmul.f32 %v1970_v32, %v1970_v32  ;;  %vm1909_vm5 = vcmp.lt.s32.totalorder %v1845_v21, 1568  ;;  %s2209_s26 = sand.u32 1, %s3344_s21   ;;  %s2574_s9 = sshll.u32 %s3266_s18, 4 }
 0x1fd   : > { %v2033_v28 = vadd.f32 %v2032_v34, %v1970_v32  ;;  %v2166_v46 = vadd.f32 %v2165_v36, %v2103_v31  ;;  %v1972_v49 = vsel %vm1908_vm4, %v3610_v4, 0.0  ;;  %vm1910_vm6 = vcmp.lt.s32.totalorder %v1846_v27, 1568  ;;  %s281_s28 = scalar_lea.vmem [#allocation9], %s3462_s10  ;;  %s287_s13 = scalar_lea.vmem [#allocation11], %s3462_s10 }
 0x1fe   : > { %v1848_v55 = vadd.s32 %v3575_v19, %v1782_v30  ;;  %v2105_v56 = vmul.f32 %v1971_v41, %v1971_v41  ;;  %v1784_v57 = vadd.s32 336, %v3572_v18  ;;  %v1973_v54 = vsel %vm1909_vm5, %v3613_v12, 0.0  ;;  %s2244_s27 = sshll.u32 %s281_s28, 4  ;;  %s2258_s23 = sshll.u32 %s287_s13, 4  ;;  %s3925_s27 = int_to_ptr.vmem [resolvable:$true] %s2244_s27  ;;  %s3932_s23 = int_to_ptr.vmem [resolvable:$true] %s2258_s23 }
 0x1ff   : > { %v2034_v59 = vadd.f32 %v2033_v28, %v1971_v41  ;;  %v2167_v60 = vadd.f32 %v2166_v46, %v2104_v48  ;;  %vm1911_vm7 = vcmp.lt.s32.totalorder %v1847_v43, 1568  ;;  %v1849_v40 = vadd.s32 %v3575_v19, %v1783_v47  ;;  %s3923_s14 = scalar_lea.hbm %s4009_s3, %s2574_s9  ;;  %s3930_s30 = scalar_lea.hbm %s4010_s4, %s2574_s9 }
 0x200   : > { %v2106_v61 = vmul.f32 %v1972_v49, %v1972_v49  ;;  %v1785_v63 = vadd.s32 344, %v3572_v18  ;;  %v1974_v4 = vsel %vm1910_vm6, %v3622_v29, 0.0  ;;  %vm1912_vm8 = vcmp.lt.s32.totalorder %v1848_v55, 1568  ;;  %s3934_s7 = scalar_lea.sflag [#allocation10], %s2209_s26  ;;  %s3156_s5 = scalar_lea.vmem %s3925_s27, 16 }
 0x201   : > { %v2035_v2 = vadd.f32 %v2034_v59, %v1972_v49  ;;  %v2168_v7 = vadd.f32 %v2167_v60, %v2105_v56  ;;  %v1786_v9 = vadd.s32 352, %v3572_v18  ;;  %v2107_v11 = vmul.f32 %v1973_v54, %v1973_v54  ;;  %p3157_p10 = scmp.ne.s32.totalorder %s3925_s27, %s3156_s5  ;;  %s3286_s11 = smov [#allocation9]  }
 0x202   : > { %v1850_v16 = vadd.s32 %v3575_v19, %v1784_v57  ;;  %v1975_v12 = vsel %vm1911_vm7, %v3625_v38, 0.0  ;;  %vm1913_vm9 = vcmp.lt.s32.totalorder %v1849_v40, 1568  ;;  %v1787_v6 = vadd.s32 360, %v3572_v18  ;;  %s3160_s25 = sshll.u32 %s3286_s11, 4  ;;  %s3161_s25 = int_to_ptr.vmem [resolvable:$false] %s3160_s25 }
 0x203   : > { %v2036_v17 = vadd.f32 %v2035_v2, %v1973_v54  ;;  %v2169_v26 = vadd.f32 %v2168_v7, %v2106_v61  ;;  %v2108_v20 = vmul.f32 %v1974_v4, %v1974_v4  ;;  %v1851_v21 = vadd.s32 %v3575_v19, %v1785_v63  ;;  %p3158_p0 = pnand %p3157_p10, %p3406_p11  ;;  %s3162_s12 = scalar_lea.vmem %s3161_s25, 32 }
 0x204   : > { %v1976_v29 = vsel %vm1912_vm8, %v3634_v53, 0.0  ;;  %v1852_v32 = vadd.s32 %v3575_v19, %v1786_v9  ;;  %v1788_v27 = vadd.s32 368, %v3572_v18  ;;  %v2109_v30 = vmul.f32 %v1975_v12, %v1975_v12  ;;  %p3163_p9 = scmp.lt.s32.totalorder %s3925_s27, %s3161_s25  ;;  %p3164_p1 = scmp.lt.s32.totalorder %s3162_s12, %s3156_s5 }
 0x205   : > { %v2037_v22 = vadd.f32 %v2036_v17, %v1974_v4  ;;  %v2170_v25 = vadd.f32 %v2169_v26, %v2107_v11  ;;  %vm1914_vm10 = vcmp.lt.s32.totalorder %v1850_v16, 1568  ;;  %v1977_v38 = vsel %vm1913_vm9, %v3637_v62, 0.0  ;;  %p3159_p5 = pneg %p3158_p0 }
 0x206   : > { %v1853_v36 = vadd.s32 %v3575_v19, %v1787_v6  ;;  %v1789_v41 = vadd.s32 376, %v3572_v18  ;;  %v2110_v43 = vmul.f32 %v1976_v29, %v1976_v29  ;;  %vm1915_vm11 = vcmp.lt.s32.totalorder %v1851_v21, 1568  ;;  %p3165_p2 = por %p3164_p1, %p3163_p9 }
 0x207   : > { %v2038_v31 = vadd.f32 %v2037_v22, %v1975_v12  ;;  %v2171_v34 = vadd.f32 %v2170_v25, %v2108_v20  ;;  %v1978_v53 = vsel %vm1914_vm10, %v3646_v14, 0.0  ;;  %vm1916_vm12 = vcmp.lt.s32.totalorder %v1852_v32, 1568 }
 0x208   : > { %v1854_v28 = vadd.s32 %v3575_v19, %v1788_v27  ;;  %v2111_v46 = vmul.f32 %v1977_v38, %v1977_v38  ;;  %v1790_v49 = vadd.s32 384, %v3572_v18  ;;  %v1979_v62 = vsel %vm1915_vm11, %v3649_v24, 0.0  ;;  %p3166_p3 = pnand %p3165_p2, %p3159_p5 }
 0x209   : > { %v2172_v47 = vadd.f32 %v2171_v34, %v2109_v30  ;;  %v2039_v48 = vadd.f32 %v2038_v31, %v1976_v29  ;;  %vm1917_vm13 = vcmp.lt.s32.totalorder %v1853_v36, 1568  ;;  %v1855_v57 = vadd.s32 %v3575_v19, %v1789_v41 }
 0x20a   : > { %v2112_v59 = vmul.f32 %v1978_v53, %v1978_v53  ;;  %v1791_v40 = vadd.s32 392, %v3572_v18  ;;  %v1980_v14 = vsel %vm1916_vm12, %v3658_v42, 0.0  ;;  %vm1918_vm14 = vcmp.lt.s32.totalorder %v1854_v28, 1568 }
 0x20b   : > { %v2040_v55 = vadd.f32 %v2039_v48, %v1977_v38  ;;  %v2173_v56 = vadd.f32 %v2172_v47, %v2110_v43  ;;  %v1792_v61 = vadd.s32 400, %v3572_v18  ;;  %v2113_v63 = vmul.f32 %v1979_v62, %v1979_v62 }
 0x20c   : > { %v1856_v2 = vadd.s32 %v3575_v19, %v1790_v49  ;;  %v1981_v24 = vsel %vm1917_vm13, %v3661_v51, 0.0  ;;  %vm1919_vm15 = vcmp.lt.s32.totalorder %v1855_v57, 1568  ;;  %v1793_v9 = vadd.s32 408, %v3572_v18 }
 0x20d   : > { %v2041_v60 = vadd.f32 %v2040_v55, %v1978_v53  ;;  %v2174_v54 = vadd.f32 %v2173_v56, %v2111_v46  ;;  %v2114_v11 = vmul.f32 %v1980_v14, %v1980_v14  ;;  %v1857_v26 = vadd.s32 %v3575_v19, %v1791_v40 }
 0x20e   : > { %v1982_v42 = vsel %vm1918_vm14, %v3670_v5, 0.0  ;;  %v1858_v12 = vadd.s32 %v3575_v19, %v1792_v61  ;;  %v1794_v6 = vadd.s32 416, %v3572_v18  ;;  %v2115_v20 = vmul.f32 %v1981_v24, %v1981_v24 }
 0x20f   : > { %v2042_v7 = vadd.f32 %v2041_v60, %v1979_v62  ;;  %v2175_v4 = vadd.f32 %v2174_v54, %v2112_v59  ;;  %vm1920_vm0 = vcmp.lt.s32.totalorder %v1856_v2, 1568  ;;  %v1983_v51 = vsel %vm1919_vm15, %v3673_v15, 0.0 }
 0x210   : > { %v1859_v25 = vadd.s32 %v3575_v19, %v1793_v9  ;;  %v1795_v29 = vadd.s32 424, %v3572_v18  ;;  %v2116_v32 = vmul.f32 %v1982_v42, %v1982_v42  ;;  %vm1921_vm1 = vcmp.lt.s32.totalorder %v1857_v26, 1568 }
 0x211   : > { %v2043_v16 = vadd.f32 %v2042_v7, %v1980_v14  ;;  %v2176_v17 = vadd.f32 %v2175_v4, %v2113_v63  ;;  %v1984_v5 = vsel %vm1920_vm0, %v3682_v35, 0.0  ;;  %vm1922_vm2 = vcmp.lt.s32.totalorder %v1858_v12, 1568 }
 0x212   : > { %v1860_v31 = vadd.s32 %v3575_v19, %v1794_v6  ;;  %v2117_v34 = vmul.f32 %v1983_v51, %v1983_v51  ;;  %v1796_v41 = vadd.s32 432, %v3572_v18  ;;  %v1985_v15 = vsel %vm1921_vm1, %v3685_v45, 0.0 }
 0x213   : > { %v2044_v21 = vadd.f32 %v2043_v16, %v1981_v24  ;;  %v2177_v22 = vadd.f32 %v2176_v17, %v2114_v11  ;;  %vm1923_vm3 = vcmp.lt.s32.totalorder %v1859_v25, 1568  ;;  %v1861_v43 = vadd.s32 %v3575_v19, %v1795_v29 }
 0x214   : > { %v2118_v48 = vmul.f32 %v1984_v5, %v1984_v5  ;;  %v1797_v28 = vadd.s32 440, %v3572_v18  ;;  %v1986_v35 = vsel %vm1922_vm2, %v3694_v0, 0.0  ;;  %vm1924_vm4 = vcmp.lt.s32.totalorder %v1860_v31, 1568 }
 0x215   : > { %v2045_v27 = vadd.f32 %v2044_v21, %v1982_v42  ;;  %v2178_v30 = vadd.f32 %v2177_v22, %v2115_v20  ;;  %v1798_v46 = vadd.s32 448, %v3572_v18  ;;  %v2119_v56 = vmul.f32 %v1985_v15, %v1985_v15 }
 0x216   : > { %v1862_v62 = vadd.s32 %v3575_v19, %v1796_v41  ;;  %v1987_v45 = vsel %vm1923_vm3, %v3697_v10, 0.0  ;;  %vm1925_vm5 = vcmp.lt.s32.totalorder %v1861_v43, 1568  ;;  %v1799_v57 = vadd.s32 456, %v3572_v18 }
 0x217   : > { %v2046_v38 = vadd.f32 %v2045_v27, %v1983_v51  ;;  %v2179_v36 = vadd.f32 %v2178_v30, %v2116_v32  ;;  %v2120_v54 = vmul.f32 %v1986_v35, %v1986_v35  ;;  %v1863_v40 = vadd.s32 %v3575_v19, %v1797_v28 }
 0x218   : > { %v1988_v0 = vsel %vm1924_vm4, %v3706_v33, 0.0  ;;  %v1864_v14 = vadd.s32 %v3575_v19, %v1798_v46  ;;  %v1800_v61 = vadd.s32 464, %v3572_v18  ;;  %v2121_v7 = vmul.f32 %v1987_v45, %v1987_v45 }
 0x219   : > { %v2047_v47 = vadd.f32 %v2046_v38, %v1984_v5  ;;  %v2180_v53 = vadd.f32 %v2179_v36, %v2117_v34  ;;  %vm1926_vm6 = vcmp.lt.s32.totalorder %v1862_v62, 1568  ;;  %v1989_v10 = vsel %vm1925_vm5, %v3709_v44, 0.0 }
 0x21a   : > { %v1865_v4 = vadd.s32 %v3575_v19, %v1799_v57  ;;  %v1801_v24 = vadd.s32 472, %v3572_v18  ;;  %v2122_v16 = vmul.f32 %v1988_v0, %v1988_v0  ;;  %vm1927_vm7 = vcmp.lt.s32.totalorder %v1863_v40, 1568 }
 0x21b   : > { %v2181_v49 = vadd.f32 %v2180_v53, %v2118_v48  ;;  %v2048_v55 = vadd.f32 %v2047_v47, %v1985_v15  ;;  %v1990_v33 = vsel %vm1926_vm6, %v3718_v1, 0.0  ;;  %vm1928_vm8 = vcmp.lt.s32.totalorder %v1864_v14, 1568 }
 0x21c   : > { %v1866_v17 = vadd.s32 %v3575_v19, %v1800_v61  ;;  %v2123_v12 = vmul.f32 %v1989_v10, %v1989_v10  ;;  %v1802_v6 = vadd.s32 480, %v3572_v18  ;;  %v1991_v44 = vsel %vm1927_vm7, %v3721_v13, 0.0 }
 0x21d   : > { %v2182_v59 = vadd.f32 %v2181_v49, %v2119_v56  ;;  %v2049_v60 = vadd.f32 %v2048_v55, %v1986_v35  ;;  %vm1929_vm9 = vcmp.lt.s32.totalorder %v1865_v4, 1568  ;;  %v1867_v20 = vadd.s32 %v3575_v19, %v1801_v24 }
 0x21e   : > { %v1803_v21 = vadd.s32 488, %v3572_v18  ;;  %v2124_v25 = vmul.f32 %v1990_v33, %v1990_v33  ;;  %v1804_v1 = vadd.s32 496, %v3572_v18  ;;  %v1992_v29 = vsel %vm1928_vm8, %v3730_v37, 0.0 }
 0x21f   : > { %v2183_v63 = vadd.f32 %v2182_v59, %v2120_v54  ;;  %v2050_v2 = vadd.f32 %v2049_v60, %v1987_v45  ;;  %vm1930_vm10 = vcmp.lt.s32.totalorder %v1866_v17, 1568  ;;  %v2125_v30 = vmul.f32 %v1991_v44, %v1991_v44 }
 0x220   : > { %v1868_v5 = vadd.s32 %v3575_v19, %v1802_v6  ;;  %v1993_v13 = vsel %vm1929_vm9, %v3733_v50, 0.0  ;;  %vm1931_vm11 = vcmp.lt.s32.totalorder %v1867_v20, 1568  ;;  %v1869_v31 = vadd.s32 %v3575_v19, %v1803_v21 }
 0x221   : > { %v2184_v9 = vadd.f32 %v2183_v63, %v2121_v7  ;;  %v2051_v11 = vadd.f32 %v2050_v2, %v1988_v0  ;;  %v1805_v34 = vadd.s32 504, %v3572_v18  ;;  %v2126_v41 = vmul.f32 %v1992_v29, %v1992_v29 }
 0x222   : > { %v1870_v15 = vadd.s32 %v3575_v19, %v1804_v1  ;;  %v1994_v37 = vsel %vm1930_vm10, %v3742_v8, 0.0  ;;  %v2127_v48 = vmul.f32 %v1993_v13, %v1993_v13  ;;  %vm1932_vm12 = vcmp.lt.s32.totalorder %v1868_v5, 1568 }
 0x223   : > { %v2185_v26 = vadd.f32 %v2184_v9, %v2122_v16  ;;  %v2052_v42 = vadd.f32 %v2051_v11, %v1989_v10  ;;  %v1995_v53 = vsel %vm1931_vm11, %v3745_v23, 0.0  ;;  %vm1933_vm13 = vcmp.lt.s32.totalorder %v1869_v31, 1568 }
 0x224   : > { %v1871_v50 = vadd.s32 %v3575_v19, %v1805_v34  ;;  %v2128_v46 = vmul.f32 %v1994_v37, %v1994_v37  ;;  %vm1934_vm14 = vcmp.lt.s32.totalorder %v1870_v15, 1568  ;;  %v1996_v18 = vsel %vm1932_vm12, %v3755_v52, 0.0 }
 0x225   : > { %v2186_v22 = vadd.f32 %v2185_v26, %v2123_v12  ;;  %v2053_v51 = vadd.f32 %v2052_v42, %v1990_v33  ;;  %v2129_v56 = vmul.f32 %v1995_v53, %v1995_v53  ;;  %v1997_v8 = vsel %vm1933_vm13, %v3760_v3, 0.0 }
 0x226   : > { %v1998_v62 = vsel %vm1934_vm14, %v3776_v39, 0.0  ;;  %v2130_v59 = vmul.f32 %v1996_v18, %v1996_v18  ;;  %vm1935_vm15 = vcmp.lt.s32.totalorder %v1871_v50, 1568  ;;  %v2131_v19 = vmul.f32 %v1997_v8, %v1997_v8 }
 0x227   : > { %v2187_v32 = vadd.f32 %v2186_v22, %v2124_v25  ;;  %v2054_v27 = vadd.f32 %v2053_v51, %v1991_v44  ;;  %v2132_v54 = vmul.f32 %v1998_v62, %v1998_v62  ;;  %v1999_v40 = vsel %vm1935_vm15, %v3784_v58, 0.0 }
 0x228   : > { %v2133_v3 = vmul.f32 %v1999_v40, %v1999_v40 }
 0x229   : > { %v2188_v38 = vadd.f32 %v2187_v32, %v2125_v30  ;;  %v2055_v36 = vadd.f32 %v2054_v27, %v1992_v29 }
 0x22b   : > { %v2189_v43 = vadd.f32 %v2188_v38, %v2126_v41  ;;  %v2056_v47 = vadd.f32 %v2055_v36, %v1993_v13 }
 0x22d   : > { %v2190_v28 = vadd.f32 %v2189_v43, %v2127_v48  ;;  %v2057_v35 = vadd.f32 %v2056_v47, %v1994_v37 }
 0x22f   : > { %v2191_v49 = vadd.f32 %v2190_v28, %v2128_v46  ;;  %v2058_v55 = vadd.f32 %v2057_v35, %v1995_v53 }
 0x231   : > { %v2192_v45 = vadd.f32 %v2191_v49, %v2129_v56  ;;  %v2059_v57 = vadd.f32 %v2058_v55, %v1996_v18 }
 0x233   : > { %v2193_v23 = vadd.f32 %v2192_v45, %v2130_v59  ;;  %v2060_v60 = vadd.f32 %v2059_v57, %v1997_v8 }
 0x235   : > { %v2194_v52 = vadd.f32 %v2193_v23, %v2131_v19  ;;  %v2061_v0 = vadd.f32 %v2060_v60, %v1998_v62 }
 0x237   : > { %v2195_v14 = vadd.f32 %v2194_v52, %v2132_v54  ;;  %v2062_v61 = vadd.f32 %v2061_v0, %v1999_v40 }
 0x239   : > { %v2063_v39 = vrot.slane %v2062_v61, 4  ;;  %v2196_v63 = vadd.f32 %v2195_v14, %v2133_v3 }
 0x23b   : > { %v2064_v2 = vadd.f32 %v2063_v39, %v2062_v61  ;;  %v2197_v7 = vrot.slane %v2196_v63, 4 }
 0x23d   : > { %v2065_v10 = vrot.slane %v2064_v2, 2  ;;  %v2198_v4 = vadd.f32 %v2197_v7, %v2196_v63 }
 0x23f   : > { %v2066_v24 = vadd.f32 %v2065_v10, %v2064_v2  ;;  %v2199_v9 = vrot.slane %v2198_v4, 2 }
 0x241   : > { %v2067_v58 = vrot.slane %v2066_v24, 1  ;;  %v2200_v11 = vadd.f32 %v2199_v9, %v2198_v4 }
 0x243   : > { %v2068_v16 = vadd.f32 %v2067_v58, %v2066_v24  ;;  %v2201_v33 = vrot.slane %v2200_v11, 1 }
 0x245   : > { %v2202_v17 = vadd.f32 %v2201_v33, %v2200_v11  ;;  %2069 = vst [vmem:[%s281_s28] sm:$0x1] %v2068_v16 }
 0x246   : > { %3169 = shalt.err (!%p3166_p3)
}
 0x247   : > { %s3170_s26 = scalar_lea.hbm %s3923_s14, 16  ;;  %s3174_s18 = scalar_lea.hbm %s4009_s3, 64 }
 0x248   : > { %p3171_p7 = scmp.ne.s32.totalorder %s3923_s14, %s3170_s26  ;;  %p3175_p6 = scmp.lt.u32.totalorder %s3923_s14, %s4009_s3 }
 0x249   : > { %p3176_p8 = scmp.lt.u32.totalorder %s3174_s18, %s3170_s26  ;;  %p3178_p10 = scmp.lt.u32.totalorder %s3170_s26, %s3923_s14 }
 0x24a   : > { %p3172_p13 = pnand %p3171_p7, %p3406_p11 }
 0x24b   : > { %p3177_p12 = por %p3176_p8, %p3175_p6 }
 0x24c   : > { %p3173_p4 = pneg %p3172_p13 }
 0x24d   : > { %p3179_p0 = por %p3178_p10, %p3177_p12 }
 0x24f   : > { %p3180_p5 = pnand %p3179_p0, %p3173_p4 }
 0x251   : > { %3183 = shalt.err (!%p3180_p5)
}
 0x252   : > { %2875 = dma.vmem_to_hbm [thread:$0]  (%p3406_p11), %s3925_s27, 16, %s3923_s14, %s3934_s7   ;;  %2203 = vst [vmem:[%s287_s13] sm:$0x1] %v2202_v17 }
 0x253   : > { %s3184_s5 = scalar_lea.vmem %s3932_s23, 16  ;;  %s3287_s25 = smov [#allocation11]  }
 0x254   : > { %p3185_p9 = scmp.ne.s32.totalorder %s3932_s23, %s3184_s5  ;;  %s3188_s12 = sshll.u32 %s3287_s25, 4  ;;  %s3189_s12 = int_to_ptr.vmem [resolvable:$false] %s3188_s12 }
 0x255   : > { %s3190_s26 = scalar_lea.vmem %s3189_s12, 32  ;;  %p3191_p3 = scmp.lt.s32.totalorder %s3932_s23, %s3189_s12 }
 0x256   : > { %p3186_p1 = pnand %p3185_p9, %p3406_p11  ;;  %p3192_p7 = scmp.lt.s32.totalorder %s3190_s26, %s3184_s5 }
 0x258   : > { %p3187_p2 = pneg %p3186_p1  ;;  %p3193_p13 = por %p3192_p7, %p3191_p3 }
 0x25a   : > { %p3194_p4 = pnand %p3193_p13, %p3187_p2 }
 0x25c   : > { %3197 = shalt.err (!%p3194_p4)
}
 0x25d   : > { %s3198_s10 = scalar_lea.hbm %s3930_s30, 16  ;;  %s3202_s14 = scalar_lea.hbm %s4010_s4, 64 }
 0x25e   : > { %p3199_p6 = scmp.ne.s32.totalorder %s3930_s30, %s3198_s10  ;;  %p3203_p10 = scmp.lt.u32.totalorder %s3930_s30, %s4010_s4 }
 0x25f   : > { %p3204_p0 = scmp.lt.u32.totalorder %s3202_s14, %s3198_s10  ;;  %p3206_p9 = scmp.lt.u32.totalorder %s3198_s10, %s3930_s30 }
 0x260   : > { %p3200_p8 = pnand %p3199_p6, %p3406_p11 }
 0x261   : > { %p3205_p5 = por %p3204_p0, %p3203_p10 }
 0x262   : > { %p3201_p12 = pneg %p3200_p8 }
 0x263   : > { %p3207_p1 = por %p3206_p9, %p3205_p5 }
 0x265   : > { %p3208_p2 = pnand %p3207_p1, %p3201_p12 }
 0x267   : > { %3211 = shalt.err (!%p3208_p2)
}
 0x268   : > { %2876 = dma.vmem_to_hbm [thread:$0]  (%p3406_p11), %s3932_s23, 16, %s3930_s30, %s3934_s7  }
 0x269 PF: > { %p2901_p3 = scmp.ge.s32.totalorder %s3274_s20, 2  ;;  %s2270_s18 = sand.u32 1, %s3254_s15  }
 0x26a   : > { %p4026_p7 = scmp.ne.s32.totalorder %s4015_s24, 0  ;;  %s2271_s21 = scalar_lea.sflag [#allocation5], %s2270_s18 }
 0x26c   : > { %p2889_p13 = pnand %p2901_p3, %p4026_p7 }
 0x26e   : > { %3245 = dma.done.wait (!%p2889_p13), %s2271_s21, 4096  }
 0x26f   : > { %3247 = vsyncadd (!%p2889_p13), %s2271_s21, 4294963200  ;;  %s2279_s11 = sand.u32 1, %s2414_s22  }
 0x270   : > { %s2280_s5 = scalar_lea.sflag [#allocation10], %s2279_s11 }
 0x271   : > { %3249 = dma.done.wait (!%p2889_p13), %s2280_s5, 32  }
 0x272   : > { %3251 = vsyncadd (!%p2889_p13), %s2280_s5, 4294967264  ;;  %s25_s20 = sadd.s32 1, %s3274_s20   ;;  %s4027_s15 = smov %s3258_s16 }
 0x273   : > { %p22_p11 = scmp.ge.s32.totalorder %s25_s20, 6   ;;  %s4028_s16 = smov %s3262_s17 }
 0x274   : > { %s4029_s17 = smov %s3415_s8  ;;  %s4030_s18 = smov %s3270_s19 }
 0x275   : > { %s4031_s19 = smov %s4033_s29  ;;  %24 = sbr.rel (!%p22_p11) target bundleno = 9 (0x9), region = 118 }
 0x27c   :  { %2292 = vsyncpa [#allocation4], 1 }
 0x27d   :  { %2294 = vsyncpa [#allocation4 + $0x1], 1 }
 0x27e   :  { %2295 = vsyncpa [#allocation7], 1 }
 0x27f   :  { %2296 = vsyncpa [#allocation5], 1 }
 0x280   :  { %2298 = vsyncpa [#allocation5 + $0x1], 1 }
 0x281   :  { %2299 = vsyncpa [#allocation10], 1 }
 0x282   :  { %2301 = vsyncpa [#allocation10 + $0x1], 1 }

</bundles_post_ra>
